<compile_context>
chip_gen: v6e
topology: v6e:2x2x1
jax: 0.10.0
libtpu: 0.0.40
codegen_flags: <defaults>
</compile_context>

<pallas_src>
import functools

import jax
import jax.numpy as jnp
from jax.experimental import pallas as pl
from jax.experimental.pallas import tpu as pltpu


def _bottleneck_kernel(H, W,
                       x_ref, w1_ref, w2_ref, w3_ref,
                       b1_ref, b2_ref, b3_ref,
                       o_ref, pad_ref):
    # TODO(synk): only the module defaults (stride=1, dilation=1, groups=1,
    # downsample=None, use_linear_modules_only=False) are implemented.
    Cin = x_ref.shape[-1]
    Wd = w1_ref.shape[-1]
    Cout = w3_ref.shape[-1]

    # Zero the padded scratch once; it persists across grid steps and its
    # interior is fully overwritten every step, so the halo stays zero.
    @pl.when(pl.program_id(0) == 0)
    def _():
        pad_ref[...] = jnp.zeros_like(pad_ref)

    # ---- conv1 (1x1, no bias; BN1 scale pre-folded into w1) + bias + relu ----
    x_bf = x_ref[0].reshape(H * W, Cin).astype(jnp.bfloat16)
    y1 = jnp.dot(x_bf, w1_ref[...], preferred_element_type=jnp.float32)
    y1 = jnp.maximum(y1 + b1_ref[...], 0.0)                         # (H*W, Wd) f32

    # ---- conv2 (3x3, padding=1, stride=1; BN2 scale folded into w2) ----
    # One im2col matmul with contraction depth K = 9*Wd instead of 9 shallow
    # K=Wd matmuls; windows are read directly from the padded ref (bf16).
    pad_ref[1:H + 1, 1:W + 1, :] = y1.reshape(H, W, Wd).astype(jnp.bfloat16)
    taps = [pad_ref[dh:dh + H, dw:dw + W, :].reshape(H * W, Wd)
            for dh in range(3) for dw in range(3)]
    col = jnp.concatenate(taps, axis=-1)                            # (H*W, 9*Wd) bf16
    y2 = jnp.dot(col, w2_ref[...], preferred_element_type=jnp.float32)
    y2 = jnp.maximum(y2 + b2_ref[...], 0.0)                         # (H*W, Wd) f32

    # ---- conv3 (1x1; BN3 scale folded into w3) + bias + residual + relu ----
    y3 = jnp.dot(y2.astype(jnp.bfloat16), w3_ref[...],
                 preferred_element_type=jnp.float32)
    y3 = y3 + b3_ref[...]
    identity = x_ref[0].reshape(H * W, Cout)        # re-read right before the add (f32)
    out = jnp.maximum(y3 + identity, 0.0)
    o_ref[0] = out.reshape(H, W, Cout).astype(o_ref.dtype)


def _fold_params(params):
    """Fold BN scales into conv weights (bf16 MXU operands); biases stay f32."""
    (w1, w2, w3, s1, b1, s2, b2, s3, b3) = params
    Wd = w1.shape[-1]
    Cout = w3.shape[-1]
    w1f = (w1 * s1.reshape(1, Wd)).astype(jnp.bfloat16)              # (Cin, Wd)
    w2f = (w2 * s2.reshape(1, 1, 1, Wd)).reshape(9 * Wd, Wd).astype(jnp.bfloat16)
    w3f = (w3 * s3.reshape(1, Cout)).astype(jnp.bfloat16)            # (Wd, Cout)
    return (w1f, w2f, w3f,
            b1.reshape(1, Wd).astype(jnp.float32),
            b2.reshape(1, Wd).astype(jnp.float32),
            b3.reshape(1, Cout).astype(jnp.float32))


def _vmem_limit_bytes(H, W, Cin, Wd, Cout):
    f32, bf16 = 4, 2
    io = 2 * H * W * (Cin + Cout) * f32                    # double-buffered in/out tiles
    wts = 2 * (Cin * Wd + 9 * Wd * Wd + Wd * Cout) * bf16  # double-buffered weights
    bias = 2 * (2 * Wd + Cout) * f32
    scratch = (H + 2) * (W + 2) * Wd * bf16                # padded activation scratch
    live = 4 * H * W * max(9 * Wd, Cout) * f32             # in-flight values (im2col, accs)
    est = io + wts + bias + scratch + live
    return int(min(max(2 * est, 16 * 2**20), 64 * 2**20))


def bottleneck_forward_nhwc(x_nhwc, params):
    """x_nhwc: (N, H, W, Cin) float32, Cin == planes * expansion."""
    (w1f, w2f, w3f, b1, b2, b3) = _fold_params(params)
    N, H, W, Cin = x_nhwc.shape
    Wd = w1f.shape[-1]
    Cout = w3f.shape[-1]
    assert Cin == Cout, "residual add requires inplanes == planes * expansion"

    kernel = functools.partial(_bottleneck_kernel, H, W)

    def const_spec(shape):
        return pl.BlockSpec(shape, lambda n: (0,) * len(shape))

    # TODO(synk): for v7x, add a second "parallel" grid axis over H row-tiles
    # (with halo rows) to use both TensorCores and shrink per-step VMEM.
    # TODO(synk): pad channel dims to multiples of 128 for lane-dense vregs when
    # width / Cin < 128 (the small demo shapes run heavily lane-padded).
    return pl.pallas_call(
        kernel,
        out_shape=jax.ShapeDtypeStruct((N, H, W, Cout), x_nhwc.dtype),
        grid_spec=pltpu.PrefetchScalarGridSpec(
            num_scalar_prefetch=0,
            grid=(N,),
            in_specs=[
                pl.BlockSpec((1, H, W, Cin), lambda n: (n, 0, 0, 0)),
                const_spec(w1f.shape),
                const_spec(w2f.shape),
                const_spec(w3f.shape),
                const_spec(b1.shape),
                const_spec(b2.shape),
                const_spec(b3.shape),
            ],
            out_specs=pl.BlockSpec((1, H, W, Cout), lambda n: (n, 0, 0, 0)),
            scratch_shapes=[pltpu.VMEM((H + 2, W + 2, Wd), jnp.bfloat16)],
        ),
        compiler_params=pltpu.CompilerParams(
            dimension_semantics=("parallel",),
            vmem_limit_bytes=_vmem_limit_bytes(H, W, Cin, Wd, Cout)),
    )(x_nhwc, w1f, w2f, w3f, b1, b2, b3)


def bottleneck_forward(x_nchw, params):
    """x_nchw: (N, Cin, H, W) float32 — PyTorch layout entry point."""
    # TODO(synk): keep activations NHWC across the whole network to amortize
    # these HBM round-trip transposes instead of paying them per block.
    x = jnp.transpose(x_nchw, (0, 2, 3, 1))                # NCHW -> NHWC
    out = bottleneck_forward_nhwc(x, params)
    return jnp.transpose(out, (0, 3, 1, 2))                # NHWC -> NCHW


def init_params(key, inplanes, planes, expansion=4, eps=1e-5):
    """Deterministic synthetic parameters (shapes from Bottleneck.__init__,
    with base_width=64, groups=1 => width = planes)."""
    width = planes
    cout = planes * expansion
    keys = jax.random.split(key, 15)

    # conv weights stored channel-last for direct use as matmul operands:
    #   w1: (Cin, width), w2: (kh, kw, width_in, width_out), w3: (width, Cout)
    w1 = 0.1 * jax.random.normal(keys[0], (inplanes, width), jnp.float32)
    w2 = 0.1 * jax.random.normal(keys[1], (3, 3, width, width), jnp.float32)
    w3 = 0.1 * jax.random.normal(keys[2], (width, cout), jnp.float32)

    def bn_fold(kg, kb, km, kv, c):
        gamma = 1.0 + 0.1 * jax.random.normal(kg, (c,), jnp.float32)
        beta = 0.1 * jax.random.normal(kb, (c,), jnp.float32)
        mean = 0.1 * jax.random.normal(km, (c,), jnp.float32)
        var = jax.random.uniform(kv, (c,), jnp.float32, 0.5, 1.5)
        scale = gamma / jnp.sqrt(var + eps)
        bias = beta - mean * scale
        return scale.reshape(1, c), bias.reshape(1, c)

    s1, b1 = bn_fold(keys[3], keys[4], keys[5], keys[6], width)
    s2, b2 = bn_fold(keys[7], keys[8], keys[9], keys[10], width)
    s3, b3 = bn_fold(keys[11], keys[12], keys[13], keys[14], cout)
    return (w1, w2, w3, s1, b1, s2, b2, s3, b3)


def _reference_forward(x_nchw, params):
    """Pure-JAX f32 reference (NHWC math) matching the PyTorch module semantics."""
    (w1, w2, w3, s1, b1, s2, b2, s3, b3) = params
    xh = jnp.transpose(x_nchw, (0, 2, 3, 1))
    y = jnp.einsum('nhwc,cd->nhwd', xh, w1)
    y = jnp.maximum(y * s1.reshape(1, 1, 1, -1) + b1.reshape(1, 1, 1, -1), 0.0)
    y = jax.lax.conv_general_dilated(
        y, w2, window_strides=(1, 1), padding='SAME',
        dimension_numbers=('NHWC', 'HWIO', 'NHWC'))
    y = jnp.maximum(y * s2.reshape(1, 1, 1, -1) + b2.reshape(1, 1, 1, -1), 0.0)
    y = jnp.einsum('nhwc,cd->nhwd', y, w3)
    y = y * s3.reshape(1, 1, 1, -1) + b3.reshape(1, 1, 1, -1)
    y = jnp.maximum(y + xh, 0.0)
    return jnp.transpose(y, (0, 3, 1, 2))


if __name__ == "__main__":
    key = jax.random.PRNGKey(0)
    k_x, k_p = jax.random.split(key)

    # Bottleneck(inplanes=16, planes=4): width=4, output channels=16 (=inplanes).
    N, inplanes, planes, H, W = 2, 16, 4, 8, 8
    x = jax.random.normal(k_x, (N, inplanes, H, W), jnp.float32)
    params = init_params(k_p, inplanes, planes)

    out = jax.block_until_ready(bottleneck_forward(x, params))
    ref = jax.block_until_ready(_reference_forward(x, params))

    assert out.shape == (N, planes * 4, H, W)
    # bf16 MXU operands (f32 accumulation) -> loosened tolerance vs f32 reference.
    assert jnp.allclose(out, ref, atol=5e-2, rtol=5e-2), "mismatch vs reference"

    print("KERNEL_OK")
</pallas_src>

<mosaic_0001>
module attributes {stable_mosaic.version = 11 : i64} {
  func.func @_bottleneck_kernel(%arg0: i32, %arg1: memref<1x8x8x16xf32, #tpu.memory_space<vmem>>, %arg2: memref<16x4xbf16, #tpu.memory_space<vmem>>, %arg3: memref<36x4xbf16, #tpu.memory_space<vmem>>, %arg4: memref<4x16xbf16, #tpu.memory_space<vmem>>, %arg5: memref<1x4xf32, #tpu.memory_space<vmem>>, %arg6: memref<1x4xf32, #tpu.memory_space<vmem>>, %arg7: memref<1x16xf32, #tpu.memory_space<vmem>>, %arg8: memref<1x8x8x16xf32, #tpu.memory_space<vmem>>, %arg9: memref<10x10x4xbf16, #tpu.memory_space<vmem>>) attributes {dimension_semantics = [#tpu.dimension_semantics<parallel>], iteration_bounds = array<i64: 2>, scalar_prefetch = 0 : i64, scratch_operands = 1 : i64, tpu.core_type = #tpu.core_type<tc>, window_params = [{transform_indices = @transform_0, window_bounds = array<i64: 1, 8, 8, 16>}, {pipeline_mode = #tpu.pipeline_mode<synchronous>, transform_indices = @transform_1, window_bounds = array<i64: 16, 4>}, {pipeline_mode = #tpu.pipeline_mode<synchronous>, transform_indices = @transform_2, window_bounds = array<i64: 36, 4>}, {pipeline_mode = #tpu.pipeline_mode<synchronous>, transform_indices = @transform_3, window_bounds = array<i64: 4, 16>}, {pipeline_mode = #tpu.pipeline_mode<synchronous>, transform_indices = @transform_4, window_bounds = array<i64: 1, 4>}, {pipeline_mode = #tpu.pipeline_mode<synchronous>, transform_indices = @transform_5, window_bounds = array<i64: 1, 4>}, {pipeline_mode = #tpu.pipeline_mode<synchronous>, transform_indices = @transform_6, window_bounds = array<i64: 1, 16>}, {transform_indices = @transform_7, window_bounds = array<i64: 1, 8, 8, 16>}]} {
    %c0_i32 = arith.constant 0 : i32
    %0 = arith.cmpi eq, %arg0, %c0_i32 : i32
    %1 = arith.extui %0 : i1 to i32
    %c0_i32_0 = arith.constant 0 : i32
    %2 = arith.cmpi ne, %1, %c0_i32_0 : i32
    scf.if %2 {
      %cst_57 = arith.constant 0.000000e+00 : bf16
      %59 = vector.broadcast %cst_57 : bf16 to vector<10x10x4xbf16>
      %c0_58 = arith.constant 0 : index
      %c0_59 = arith.constant 0 : index
      %c0_60 = arith.constant 0 : index
      %60 = vector.load %arg9[%c0_58, %c0_59, %c0_60] : memref<10x10x4xbf16, #tpu.memory_space<vmem>>, vector<10x10x4xbf16>
      tpu.vector_store %arg9[%c0_58, %c0_59, %c0_60], %59 {strides = array<i32>} : memref<10x10x4xbf16, #tpu.memory_space<vmem>>, vector<10x10x4xbf16>,
    } else {
    }
    %c0 = arith.constant 0 : index
    %c0_1 = arith.constant 0 : index
    %c0_2 = arith.constant 0 : index
    %c0_3 = arith.constant 0 : index
    %3 = vector.load %arg1[%c0, %c0_1, %c0_2, %c0_3] : memref<1x8x8x16xf32, #tpu.memory_space<vmem>>, vector<1x8x8x16xf32>
    %4 = vector.shape_cast %3 : vector<1x8x8x16xf32> to vector<8x8x16xf32>
    %5 = vector.shape_cast %4 : vector<8x8x16xf32> to vector<64x16xf32>
    %6 = arith.truncf %5 : vector<64x16xf32> to vector<64x16xbf16>
    %c0_4 = arith.constant 0 : index
    %c0_5 = arith.constant 0 : index
    %7 = vector.load %arg2[%c0_4, %c0_5] : memref<16x4xbf16, #tpu.memory_space<vmem>>, vector<16x4xbf16>
    %cst = arith.constant dense<0.000000e+00> : vector<64x4xf32>
    %8 = tpu.matmul %6, %7, %cst {dimension_numbers = #tpu.dot_dimension_numbers<[1], [0], [0], [1], [0, 0, 1, 1], [], []>} : vector<64x16xbf16>, vector<16x4xbf16>, vector<64x4xf32> -> vector<64x4xf32>
    %c0_6 = arith.constant 0 : index
    %c0_7 = arith.constant 0 : index
    %9 = vector.load %arg5[%c0_6, %c0_7] : memref<1x4xf32, #tpu.memory_space<vmem>>, vector<1x4xf32>
    %10 = vector.broadcast %9 : vector<1x4xf32> to vector<64x4xf32>
    %11 = arith.addf %8, %10 : vector<64x4xf32>
    %cst_8 = arith.constant 0.000000e+00 : f32
    %12 = vector.broadcast %cst_8 : f32 to vector<64x4xf32>
    %13 = arith.maximumf %11, %12 : vector<64x4xf32>
    %14 = vector.shape_cast %13 : vector<64x4xf32> to vector<8x8x4xf32>
    %15 = arith.truncf %14 : vector<8x8x4xf32> to vector<8x8x4xbf16>
    %c1 = arith.constant 1 : index
    %c1_9 = arith.constant 1 : index
    %c0_10 = arith.constant 0 : index
    %16 = vector.load %arg9[%c1, %c1_9, %c0_10] : memref<10x10x4xbf16, #tpu.memory_space<vmem>>, vector<8x8x4xbf16>
    tpu.vector_store %arg9[%c1, %c1_9, %c0_10], %15 {strides = array<i32>} : memref<10x10x4xbf16, #tpu.memory_space<vmem>>, vector<8x8x4xbf16>,
    %c0_11 = arith.constant 0 : index
    %c0_12 = arith.constant 0 : index
    %c0_13 = arith.constant 0 : index
    %17 = vector.load %arg9[%c0_11, %c0_12, %c0_13] : memref<10x10x4xbf16, #tpu.memory_space<vmem>>, vector<8x8x4xbf16>
    %18 = vector.shape_cast %17 : vector<8x8x4xbf16> to vector<64x4xbf16>
    %c0_14 = arith.constant 0 : index
    %c1_15 = arith.constant 1 : index
    %c0_16 = arith.constant 0 : index
    %19 = vector.load %arg9[%c0_14, %c1_15, %c0_16] : memref<10x10x4xbf16, #tpu.memory_space<vmem>>, vector<8x8x4xbf16>
    %20 = vector.shape_cast %19 : vector<8x8x4xbf16> to vector<64x4xbf16>
    %c0_17 = arith.constant 0 : index
    %c2 = arith.constant 2 : index
    %c0_18 = arith.constant 0 : index
    %21 = vector.load %arg9[%c0_17, %c2, %c0_18] : memref<10x10x4xbf16, #tpu.memory_space<vmem>>, vector<8x8x4xbf16>
    %22 = vector.shape_cast %21 : vector<8x8x4xbf16> to vector<64x4xbf16>
    %c1_19 = arith.constant 1 : index
    %c0_20 = arith.constant 0 : index
    %c0_21 = arith.constant 0 : index
    %23 = vector.load %arg9[%c1_19, %c0_20, %c0_21] : memref<10x10x4xbf16, #tpu.memory_space<vmem>>, vector<8x8x4xbf16>
    %24 = vector.shape_cast %23 : vector<8x8x4xbf16> to vector<64x4xbf16>
    %c1_22 = arith.constant 1 : index
    %c1_23 = arith.constant 1 : index
    %c0_24 = arith.constant 0 : index
    %25 = vector.load %arg9[%c1_22, %c1_23, %c0_24] : memref<10x10x4xbf16, #tpu.memory_space<vmem>>, vector<8x8x4xbf16>
    %26 = vector.shape_cast %25 : vector<8x8x4xbf16> to vector<64x4xbf16>
    %c1_25 = arith.constant 1 : index
    %c2_26 = arith.constant 2 : index
    %c0_27 = arith.constant 0 : index
    %27 = vector.load %arg9[%c1_25, %c2_26, %c0_27] : memref<10x10x4xbf16, #tpu.memory_space<vmem>>, vector<8x8x4xbf16>
    %28 = vector.shape_cast %27 : vector<8x8x4xbf16> to vector<64x4xbf16>
    %c2_28 = arith.constant 2 : index
    %c0_29 = arith.constant 0 : index
    %c0_30 = arith.constant 0 : index
    %29 = vector.load %arg9[%c2_28, %c0_29, %c0_30] : memref<10x10x4xbf16, #tpu.memory_space<vmem>>, vector<8x8x4xbf16>
    %30 = vector.shape_cast %29 : vector<8x8x4xbf16> to vector<64x4xbf16>
    %c2_31 = arith.constant 2 : index
    %c1_32 = arith.constant 1 : index
    %c0_33 = arith.constant 0 : index
    %31 = vector.load %arg9[%c2_31, %c1_32, %c0_33] : memref<10x10x4xbf16, #tpu.memory_space<vmem>>, vector<8x8x4xbf16>
    %32 = vector.shape_cast %31 : vector<8x8x4xbf16> to vector<64x4xbf16>
    %c2_34 = arith.constant 2 : index
    %c2_35 = arith.constant 2 : index
    %c0_36 = arith.constant 0 : index
    %33 = vector.load %arg9[%c2_34, %c2_35, %c0_36] : memref<10x10x4xbf16, #tpu.memory_space<vmem>>, vector<8x8x4xbf16>
    %34 = vector.shape_cast %33 : vector<8x8x4xbf16> to vector<64x4xbf16>
    %35 = tpu.concatenate %18, %20, %22, %24, %26, %28, %30, %32, %34 in 1 : vector<64x4xbf16>, vector<64x4xbf16>, vector<64x4xbf16>, vector<64x4xbf16>, vector<64x4xbf16>, vector<64x4xbf16>, vector<64x4xbf16>, vector<64x4xbf16>, vector<64x4xbf16> -> vector<64x36xbf16>
    %c0_37 = arith.constant 0 : index
    %c0_38 = arith.constant 0 : index
    %36 = vector.load %arg3[%c0_37, %c0_38] : memref<36x4xbf16, #tpu.memory_space<vmem>>, vector<36x4xbf16>
    %cst_39 = arith.constant dense<0.000000e+00> : vector<64x4xf32>
    %37 = tpu.matmul %35, %36, %cst_39 {dimension_numbers = #tpu.dot_dimension_numbers<[1], [0], [0], [1], [0, 0, 1, 1], [], []>} : vector<64x36xbf16>, vector<36x4xbf16>, vector<64x4xf32> -> vector<64x4xf32>
    %c0_40 = arith.constant 0 : index
    %c0_41 = arith.constant 0 : index
    %38 = vector.load %arg6[%c0_40, %c0_41] : memref<1x4xf32, #tpu.memory_space<vmem>>, vector<1x4xf32>
    %39 = vector.broadcast %38 : vector<1x4xf32> to vector<64x4xf32>
    %40 = arith.addf %37, %39 : vector<64x4xf32>
    %cst_42 = arith.constant 0.000000e+00 : f32
    %41 = vector.broadcast %cst_42 : f32 to vector<64x4xf32>
    %42 = arith.maximumf %40, %41 : vector<64x4xf32>
    %43 = arith.truncf %42 : vector<64x4xf32> to vector<64x4xbf16>
    %c0_43 = arith.constant 0 : index
    %c0_44 = arith.constant 0 : index
    %44 = vector.load %arg4[%c0_43, %c0_44] : memref<4x16xbf16, #tpu.memory_space<vmem>>, vector<4x16xbf16>
    %cst_45 = arith.constant dense<0.000000e+00> : vector<64x16xf32>
    %45 = tpu.matmul %43, %44, %cst_45 {dimension_numbers = #tpu.dot_dimension_numbers<[1], [0], [0], [1], [0, 0, 1, 1], [], []>} : vector<64x4xbf16>, vector<4x16xbf16>, vector<64x16xf32> -> vector<64x16xf32>
    %c0_46 = arith.constant 0 : index
    %c0_47 = arith.constant 0 : index
    %46 = vector.load %arg7[%c0_46, %c0_47] : memref<1x16xf32, #tpu.memory_space<vmem>>, vector<1x16xf32>
    %47 = vector.broadcast %46 : vector<1x16xf32> to vector<64x16xf32>
    %48 = arith.addf %45, %47 : vector<64x16xf32>
    %c0_48 = arith.constant 0 : index
    %c0_49 = arith.constant 0 : index
    %c0_50 = arith.constant 0 : index
    %c0_51 = arith.constant 0 : index
    %49 = vector.load %arg1[%c0_48, %c0_49, %c0_50, %c0_51] : memref<1x8x8x16xf32, #tpu.memory_space<vmem>>, vector<1x8x8x16xf32>
    %50 = vector.shape_cast %49 : vector<1x8x8x16xf32> to vector<8x8x16xf32>
    %51 = vector.shape_cast %50 : vector<8x8x16xf32> to vector<64x16xf32>
    %52 = arith.addf %48, %51 : vector<64x16xf32>
    %cst_52 = arith.constant 0.000000e+00 : f32
    %53 = vector.broadcast %cst_52 : f32 to vector<64x16xf32>
    %54 = arith.maximumf %52, %53 : vector<64x16xf32>
    %55 = vector.shape_cast %54 : vector<64x16xf32> to vector<8x8x16xf32>
    %c0_53 = arith.constant 0 : index
    %c0_54 = arith.constant 0 : index
    %c0_55 = arith.constant 0 : index
    %c0_56 = arith.constant 0 : index
    %56 = vector.load %arg8[%c0_53, %c0_54, %c0_55, %c0_56] : memref<1x8x8x16xf32, #tpu.memory_space<vmem>>, vector<1x8x8x16xf32>
    %57 = vector.shape_cast %56 : vector<1x8x8x16xf32> to vector<8x8x16xf32>
    %58 = vector.shape_cast %55 : vector<8x8x16xf32> to vector<1x8x8x16xf32>
    tpu.vector_store %arg8[%c0_53, %c0_54, %c0_55, %c0_56], %58 {strides = array<i32>} : memref<1x8x8x16xf32, #tpu.memory_space<vmem>>, vector<1x8x8x16xf32>,
    return
  }
  func.func @transform_0(%arg0: i32) -> (i32, i32, i32, i32) {
    %c0_i32 = arith.constant 0 : i32
    %c0_i32_0 = arith.constant 0 : i32
    %c0_i32_1 = arith.constant 0 : i32
    %c0_i32_2 = arith.constant 0 : i32
    return %arg0, %c0_i32, %c0_i32_0, %c0_i32_1 : i32, i32, i32, i32
  }
  func.func @transform_1(%arg0: i32) -> (i32, i32) {
    %c0_i32 = arith.constant 0 : i32
    %c0_i32_0 = arith.constant 0 : i32
    %c0_i32_1 = arith.constant 0 : i32
    return %c0_i32, %c0_i32_0 : i32, i32
  }
  func.func @transform_2(%arg0: i32) -> (i32, i32) {
    %c0_i32 = arith.constant 0 : i32
    %c0_i32_0 = arith.constant 0 : i32
    %c0_i32_1 = arith.constant 0 : i32
    return %c0_i32, %c0_i32_0 : i32, i32
  }
  func.func @transform_3(%arg0: i32) -> (i32, i32) {
    %c0_i32 = arith.constant 0 : i32
    %c0_i32_0 = arith.constant 0 : i32
    %c0_i32_1 = arith.constant 0 : i32
    return %c0_i32, %c0_i32_0 : i32, i32
  }
  func.func @transform_4(%arg0: i32) -> (i32, i32) {
    %c0_i32 = arith.constant 0 : i32
    %c0_i32_0 = arith.constant 0 : i32
    %c0_i32_1 = arith.constant 0 : i32
    return %c0_i32, %c0_i32_0 : i32, i32
  }
  func.func @transform_5(%arg0: i32) -> (i32, i32) {
    %c0_i32 = arith.constant 0 : i32
    %c0_i32_0 = arith.constant 0 : i32
    %c0_i32_1 = arith.constant 0 : i32
    return %c0_i32, %c0_i32_0 : i32, i32
  }
  func.func @transform_6(%arg0: i32) -> (i32, i32) {
    %c0_i32 = arith.constant 0 : i32
    %c0_i32_0 = arith.constant 0 : i32
    %c0_i32_1 = arith.constant 0 : i32
    return %c0_i32, %c0_i32_0 : i32, i32
  }
  func.func @transform_7(%arg0: i32) -> (i32, i32, i32, i32) {
    %c0_i32 = arith.constant 0 : i32
    %c0_i32_0 = arith.constant 0 : i32
    %c0_i32_1 = arith.constant 0 : i32
    %c0_i32_2 = arith.constant 0 : i32
    return %arg0, %c0_i32, %c0_i32_0, %c0_i32_1 : i32, i32, i32, i32
  }
}

</mosaic_0001>

<bundles_post_ra>
// kernel: tpu_custom_call.1
= control target key start
LH: loop header
LB: loop body
LE: loop exit
PB: predicated region body
PF: predicated region fallthrough
CT: control target
= control target key end

     0   :  { %12 = vsyncpa [#allocation4], 0  ;;  %s2910_s0 = inlined_call_operand.hbm [shape: f32[2,8,8,16], index: 0, kind: input, shape index: {}]   ;;  %s2911_s1 = inlined_call_operand.vmem [shape: bf16[16,4], index: 1, kind: input, shape index: {}]   ;;  %s2912_s2 = inlined_call_operand.vmem [shape: bf16[36,4], index: 2, kind: input, shape index: {}]   ;;  %s2913_s3 = inlined_call_operand.vmem [shape: bf16[4,16], index: 3, kind: input, shape index: {}]   ;;  %s2914_s4 = inlined_call_operand.vmem [shape: f32[1,4], index: 4, kind: input, shape index: {}]   ;;  %s2915_s5 = inlined_call_operand.vmem [shape: f32[1,4], index: 5, kind: input, shape index: {}]   ;;  %s2916_s6 = inlined_call_operand.vmem [shape: f32[1,16], index: 6, kind: input, shape index: {}]   ;;  %s2917_s7 = inlined_call_operand.hbm [shape: f32[2,8,8,16], index: 7, kind: output, shape index: {}]  }
   0x1   :  { %14 = vsyncpa [#allocation4 + $0x1], 0 }
   0x2   :  { %15 = vsyncpa [#allocation5], 0 }
   0x3   :  { %17 = vsyncpa [#allocation5 + $0x1], 0  ;;  %s2148_s24 = smov 0   ;;  %s2150_s25 = smov 0  }
   0x4   :  { %s2152_s26 = smov 0   ;;  %s2154_s27 = smov 0  }
   0x5 LB: > { %s2169_s28 = sadd.s32 4294967295, %s2092_s27   ;;  %s1758_s29 = sadd.s32 4294967294, %s2092_s27   ;;  %s2092_s27 = sphi %s2154_s27, %s2968_s27   ;;  %s2088_s26 = sphi %s2152_s26, %s2967_s26   ;;  %s2084_s25 = sphi %s2150_s25, %s2966_s25   ;;  %s2080_s24 = sphi %s2148_s24, %s2965_s24  }
   0x6   : > { %s2173_s30 = sadd.s32 1, %s2092_s27   ;;  %s30_s8 = sadd.s32 1, %s2088_s26 }
   0x7   : > { %s27_s9 = ssub.s32 %s2092_s27, %s2173_s30  ;;  %p37_p0 = scmp.ne.s32.totalorder %s2088_s26, %s2084_s25 }
   0x8   : > { %p28_p1 = scmp.eq.s32.totalorder %s27_s9, 0  ;;  %p38_p2 = scmp.eq.s32.totalorder %s2092_s27, 0 }
   0x9   : > { %p43_p3 = scmp.ne.s32.totalorder %s2084_s25, %s2080_s24  ;;  %p44_p4 = scmp.eq.s32.totalorder %s2169_s28, 0 }
   0xa   : > { %s2185_s10 = scalar_select %p28_p1, %s2088_s26, %s30_s8  }
   0xb   : > { %p2187_p5 = por %p38_p2, %p37_p0  ;;  %p2191_p6 = por %p44_p4, %p43_p3 }
   0xc   : > { %p193_p7 = scmp.eq.s32.totalorder %s2169_s28, 1  ;;  %p199_p8 = scmp.eq.s32.totalorder %s1758_s29, 1 }
   0xd   : > { %s2923_s12 = scalar_select %p2191_p6, 1, 0 }
   0xe   : > { %p1937_p10 = scmp.lt.s32.totalorder %s2092_s27, 2  ;;  %p2198_p11 = por %p193_p7, %p37_p0 }
   0xf   : > { %p2202_p12 = por %p199_p8, %p43_p3  ;;  %s237_s15 = sand.u32 1, %s2088_s26  }
  0x10   : > { %s2924_s13 = scalar_select %p2198_p11, 1, 0 }
  0x11   : > { %s2925_s14 = scalar_select %p2202_p12, 1, 0 }
  0x12   : > { %s1860_s16 = sshll.u32 %s2092_s27, 10  ;;  %s1761_s17 = sshll.u32 %s237_s15, 6 }
  0x13   : > { %s2211_s20 = scalar_lea.hbm %s2910_s0, %s1860_s16  ;;  %s241_s21 = scalar_lea.vmem [#allocation3], %s1761_s17 }
  0x14   : > { %s248_s22 = sshll.u32 %s241_s21, 4  ;;  %p2215_p13 = pnand %p1937_p10, %p2187_p5  ;;  %s2219_s22 = int_to_ptr.vmem [resolvable:$true] %s248_s22 }
  0x15   : > { %s2221_s29 = scalar_lea.sflag [#allocation4], %s237_s15  ;;  %s2000_s8 = scalar_lea.hbm %s2211_s20, 1024 }
  0x16   : > { %p2001_p0 = scmp.ne.s32.totalorder %s2211_s20, %s2000_s8  ;;  %p2002_p1 = pneg %p2215_p13 }
  0x17   : > { %s2005_s17 = scalar_lea.hbm %s2910_s0, 2048  ;;  %p2006_p4 = scmp.lt.s32.totalorder %s2211_s20, %s2910_s0 }
  0x18   : > { %p2003_p2 = pnand %p2002_p1, %p2001_p0  ;;  %p2007_p5 = scmp.lt.s32.totalorder %s2005_s17, %s2000_s8 }
  0x1a   : > { %p2004_p3 = pneg %p2003_p2  ;;  %p2008_p7 = por %p2007_p5, %p2006_p4 }
  0x1c   : > { %p2009_p8 = pnand %p2008_p7, %p2004_p3 }
  0x1e   : > { %2012 = shalt.err (!%p2009_p8)
}
  0x1f   : > { %s2013_s15 = scalar_lea.vmem %s2219_s22, 1024  ;;  %s2094_s19 = smov [#allocation3]  }
  0x20   : > { %p2014_p10 = scmp.ne.s32.totalorder %s2219_s22, %s2013_s15  ;;  %s2018_s21 = sshll.u32 %s2094_s19, 4  ;;  %s2019_s21 = int_to_ptr.vmem [resolvable:$false] %s2018_s21 }
  0x21   : > { %s2020_s9 = scalar_lea.vmem %s2019_s21, 2048  ;;  %p2021_p2 = scmp.lt.s32.totalorder %s2219_s22, %s2019_s21 }
  0x22   : > { %p2016_p9 = pnand %p2014_p10, %p2002_p1  ;;  %p2022_p12 = scmp.lt.s32.totalorder %s2020_s9, %s2013_s15 }
  0x24   : > { %p2017_p0 = pneg %p2016_p9  ;;  %p2023_p11 = por %p2022_p12, %p2021_p2 }
  0x26   : > { %p2024_p6 = pnand %p2023_p11, %p2017_p0 }
  0x28   : > { %2027 = shalt.err (!%p2024_p6)
}
  0x29   : > { %s2095_s8 = smov 128   ;;  %s2096_s16 = smov 8  }
  0x2a   : > { %1932 = dma.hbm_to_vmem [thread:$0]  (!%p2215_p13), %s2211_s20, 1024, %s2219_s22, %s2221_s29, %s2095_s8, %s2095_s8, %s2096_s16  }
  0x2b   : > { %p1764_p9 = scmp.ge.s32.totalorder %s2092_s27, 1  ;;  %p256_p1 = scmp.lt.s32.totalorder %s2092_s27, 3 }
  0x2d   : > { %p257_p3 = pnand %p1764_p9, %p256_p1 }
  0x2f   : > { %260 = sbr.rel (%p257_p3) target bundleno = 923 (0x39b), region = 48 }
  0x34   : > { %s2245_s17 = sand.u32 1, %s2084_s25   ;;  %p2927_p6 = scmp.ne.s32.totalorder %s2923_s12, 0 }
  0x35   : > { %s1765_s11 = sshll.u32 %s2245_s17, 6  ;;  %s263_s18 = scalar_lea.sflag [#allocation4], %s2245_s17 }
  0x36   : > { %s2249_s15 = scalar_lea.vmem [#allocation3], %s1765_s11 }
  0x37   : > { %2071 = dma.done.wait (%p2927_p6), %s263_s18, 1024  }
  0x38   : > { %2073 = vsyncadd (%p2927_p6), %s263_s18, 4294966272  ;;  %s2255_s20 = scalar_lea.vmem [#allocation6], %s1765_s11  ;;  %p1767_p11 = scmp.ne.s32.totalorder %s2169_s28, 0 }
  0x3a   : > { %301 = sbr.rel (%p1767_p11) target bundleno = 74 (0x4a), region = 56 }
  0x3f   : > { %vm302_vm0 = vcmask 27648   ;;  %vm304_vm1 = vcmask 24576   ;;  %v2097_v0 = vmov 0  }
  0x40   : > { %303 = vst.msk [vmem:[#allocation2] sm:$0xf] %vm302_vm0, %v2097_v0  ;;  %306 = vst.msk [vmem:[#allocation2 + $0x8] sm:$0xf] %vm302_vm0, %v2097_v0 }
  0x41   : > { %308 = vst.msk [vmem:[#allocation2 + $0x10] sm:$0xf] %vm302_vm0, %v2097_v0  ;;  %310 = vst.msk [vmem:[#allocation2 + $0x18] sm:$0xf] %vm302_vm0, %v2097_v0 }
  0x42   : > { %312 = vst.msk [vmem:[#allocation2 + $0x20] sm:$0xf] %vm302_vm0, %v2097_v0  ;;  %314 = vst.msk [vmem:[#allocation2 + $0x28] sm:$0xf] %vm302_vm0, %v2097_v0 }
  0x43   : > { %316 = vst.msk [vmem:[#allocation2 + $0x30] sm:$0xf] %vm302_vm0, %v2097_v0  ;;  %318 = vst.msk [vmem:[#allocation2 + $0x38] sm:$0xf] %vm302_vm0, %v2097_v0 }
  0x44   : > { %320 = vst.msk [vmem:[#allocation2 + $0x40] sm:$0xf] %vm302_vm0, %v2097_v0  ;;  %322 = vst.msk [vmem:[#allocation2 + $0x48] sm:$0xf] %vm302_vm0, %v2097_v0 }
  0x45   : > { %305 = vst.msk [vmem:[#allocation2 + $0x4] sm:$0x1] %vm304_vm1, %v2097_v0  ;;  %307 = vst.msk [vmem:[#allocation2 + $0xc] sm:$0x1] %vm304_vm1, %v2097_v0 }
  0x46   : > { %309 = vst.msk [vmem:[#allocation2 + $0x14] sm:$0x1] %vm304_vm1, %v2097_v0  ;;  %311 = vst.msk [vmem:[#allocation2 + $0x1c] sm:$0x1] %vm304_vm1, %v2097_v0 }
  0x47   : > { %313 = vst.msk [vmem:[#allocation2 + $0x24] sm:$0x1] %vm304_vm1, %v2097_v0  ;;  %315 = vst.msk [vmem:[#allocation2 + $0x2c] sm:$0x1] %vm304_vm1, %v2097_v0 }
  0x48   : > { %317 = vst.msk [vmem:[#allocation2 + $0x34] sm:$0x1] %vm304_vm1, %v2097_v0  ;;  %319 = vst.msk [vmem:[#allocation2 + $0x3c] sm:$0x1] %vm304_vm1, %v2097_v0 }
  0x49   : > { %321 = vst.msk [vmem:[#allocation2 + $0x44] sm:$0x1] %vm304_vm1, %v2097_v0  ;;  %323 = vst.msk [vmem:[#allocation2 + $0x4c] sm:$0x1] %vm304_vm1, %v2097_v0 }
  0x4a PF: > { %v1983_v1 = vld [vmem:[%s2911_s1] sm:$0xff]   ;;  %v324_v2 = vld [vmem:[%s2249_s15] sm:$0xff]  ;;  %v325_v3 = vld [vmem:[%s2249_s15 + $0x8] sm:$0xff]  ;;  %vm351_vm2 = vcmask 130048   ;;  %vm550_vm3 = vcmask 27648   ;;  %vm556_vm5 = vcmask 24576  }
  0x4b   : > { %v328_v4 = vld [vmem:[%s2249_s15 + $0x20] sm:$0xff]  ;;  %1887 = vmatprep.subr.bf16.mxu0 %v1983_v1  ;;  %1921 = vmatprep.subr.bf16.mxu1 %v1983_v1  ;;  %v332_v5 = vpack.c.bf16 %v325_v3, %v324_v2  ;;  %v329_v6 = vld [vmem:[%s2249_s15 + $0x28] sm:$0xff]  ;;  %v326_v7 = vld [vmem:[%s2249_s15 + $0x10] sm:$0xff]  ;;  %vm551_vm4 = vsmask.f32 7938  ;;  %vm759_vm9 = vcmask 1042432  }
  0x4c   : > { %v327_v8 = vld [vmem:[%s2249_s15 + $0x18] sm:$0xff]  ;;  %1888 = vmatpush3.bf16.msra.mxu0 %v1983_v1  ;;  %1922 = vmatpush3.bf16.msra.mxu1 %v1983_v1  ;;  %v334_v9 = vpack.c.bf16 %v329_v6, %v328_v4  ;;  %v330_v11 = vld [vmem:[%s2249_s15 + $0x30] sm:$0xff]  ;;  %vm557_vm6 = vsmask.f32 256  ;;  %v568_v58 = vld [vmem:[#allocation2 + $0x18] sm:$0xf] }
  0x4d   : > { %v333_v10 = vpack.c.bf16 %v327_v8, %v326_v7  ;;  %v331_v12 = vld [vmem:[%s2249_s15 + $0x38] sm:$0xff]  ;;  %1889 = vmatprep.mubr.msk.bf16.mxu0 %vm351_vm2, %v332_v5  ;;  %v604_v14 = vld [vmem:[#allocation2] sm:$0xf]  ;;  %v2294_v27 = vld [vmem:[#allocation2 + $0x4] sm:$0x1]  ;;  %vm760_vm10 = vcmask 1046532  }
  0x4e   : > { %v335_v13 = vpack.c.bf16 %v331_v12, %v330_v11  ;;  %1893 = vmatprep.mubr.msk.bf16.mxu1 %vm351_vm2, %v334_v9  ;;  %v2283_v15 = vld [vmem:[#allocation2 + $0x48] sm:$0xf]  ;;  %v624_v16 = vshrl.u32 %v604_v14, 16  ;;  %v627_v17 = vshll.u32 %v604_v14, 16  ;;  %v1768_v18 = vld [vmem:[%s2914_s4] ss:$0 sm:$0xff]  ;;  %vm2314_vm7 = vmand %vm550_vm3, %vm551_vm4 }
  0x4f   : > { %1890 = vmatmul.mubr.msk.bf16.vlgmr.msra.gmra.mxu0 %vm351_vm2, %v333_v10  ;;  %v1094_v19 = vshrl.u32 %v2283_v15, 16  ;;  %v1097_v20 = vshll.u32 %v2283_v15, 16  ;;  %v2296_v28 = vld [vmem:[#allocation2] sm:$0xe]  ;;  %v764_v40 = vrot.slane %v2294_v27, 5  ;;  %v633_v42 = vshll.u32 %v2294_v27, 16  ;;  %vm2324_vm8 = vmand %vm556_vm5, %vm557_vm6 }
  0x50   : > { %1894 = vmatmul.mubr.msk.bf16.vlgmr.msra.gmra.mxu1 %vm351_vm2, %v335_v13  ;;  %v2290_v23 = vrot.slane %v624_v16, 4  ;;  %v2292_v24 = vrot.slane %v627_v17, 5  ;;  %v1782_v39 = vrot.slane %v2296_v28, 9  ;;  %v2307_v47 = vld [vmem:[#allocation2 + $0x4c] sm:$0x1]  ;;  %vm2382_vm13 = vmor %vm759_vm9, %vm760_vm10  ;;  %s2098_s19 = smov 12  }
  0x51   : > { %v2298_v31 = vrot.slane %v1094_v19, 4  ;;  %v2300_v32 = vrot.slane %v1097_v20, 5  ;;  %2928 = vst [vmem:[#allocation9_spill] sm:$0xff] %v2307_v47  ;;  %v1103_v53 = vshll.u32 %v2307_v47, 16  ;;  %v571_v1 = vld [vmem:[#allocation2 + $0x1c] sm:$0x1] }
  0x52   : > { %v630_v41 = vor.u32 %v2292_v24, %v2290_v23  ;;  %v592_v3 = vld [vmem:[#allocation2 + $0x38] sm:$0xf]  ;;  %v595_v7 = vld [vmem:[#allocation2 + $0x3c] sm:$0x1]  ;;  %v553_v19 = vld [vmem:[#allocation2 + $0x8] sm:$0xf] }
  0x53   : > { %v1100_v52 = vor.u32 %v2300_v32, %v2298_v31  ;;  %vm620_vm11 = vsmask.f32 3328  ;;  %vm621_vm12 = vsmask.f32 7440  ;;  %s2099_s21 = smov 24   ;;  %s2100_s9 = smov 8  }
  0x54   : > { %vm2411_vm14 = vmor %vm620_vm11, %vm621_vm12  ;;  %s2101_s8 = smov 20   ;;  %s2102_s16 = smov 32   ;;  %vm1470_vm15 = vcmask 1041408   ;;  %vm1359_vm0 = vcmask 31744   ;;  %vm1372_vm1 = vcmask 64512   ;;  %vm1381_vm3 = vcmask 97280  }
  0x55   : > { %s2103_s11 = smov 16   ;;  %s2104_s18 = smov 28   ;;  %vm1398_vm4 = vcmask 162816   ;;  %vm1407_vm5 = vcmask 195584   ;;  %vm1416_vm6 = vcmask 228352  }
  0x56   : > { %s2105_s12 = smov 4   ;;  %s1869_s29 = sshll.u32 %s2169_s28, 10 }
  0x57   : > { %s1672_s28 = scalar_lea.sflag [#allocation5], %s2245_s17  ;;  %p2962_p13 = scmp.ne.s32.totalorder %s2924_s13, 0 }
 0x10f   : > { %v1891_v21 = vpop.f32.mrf.mxu0 }
 0x110   : > { %v1895_v22 = vpop.f32.mrf.mxu1  ;;  %v407_v25 = vadd.f32 %v1891_v21, %v1768_v18 }
 0x111   : > { %v423_v26 = vadd.f32 %v1895_v22, %v1768_v18  ;;  %v398_v29 = vpop.f32.mrf.mxu0 }
 0x112   : > { %v414_v30 = vpop.f32.mrf.mxu1  ;;  %v431_v33 = vmax.f32 %v407_v25, 0.0  ;;  %v399_v35 = vadd.f32 %v1768_v18, %v398_v29 }
 0x113   : > { %v435_v34 = vmax.f32 %v423_v26, 0.0  ;;  %v415_v36 = vadd.f32 %v1768_v18, %v414_v30  ;;  %v1892_v37 = vpop.f32.mrf.mxu0  ;;  %v559_v30 = vld [vmem:[#allocation2 + $0xc] sm:$0x1] }
 0x114   : > { %v1896_v38 = vpop.f32.mrf.mxu1  ;;  %v1863_v43 = vpack.c.bf16 %v431_v33, %v431_v33  ;;  %v429_v45 = vmax.f32 %v399_v35, 0.0  ;;  %v410_v48 = vadd.f32 %v1892_v37, %v1768_v18  ;;  %v580_v33 = vld [vmem:[#allocation2 + $0x28] sm:$0xf] }
 0x115   : > { %v1867_v44 = vpack.c.bf16 %v435_v34, %v435_v34  ;;  %v433_v46 = vmax.f32 %v415_v36, 0.0  ;;  %v426_v49 = vadd.f32 %v1896_v38, %v1768_v18  ;;  %v401_v50 = vpop.f32.mrf.mxu0  ;;  %v583_v34 = vld [vmem:[#allocation2 + $0x2c] sm:$0x1] }
 0x116   : > { %v417_v51 = vpop.f32.mrf.mxu1  ;;  %v486_v54 = vshrl.u32 %v1863_v43, 16  ;;  %v489_v55 = vshll.u32 %v1863_v43, 16  ;;  %v1861_v59 = vpack.c.bf16 %v429_v45, %v429_v45  ;;  %v432_v61 = vmax.f32 %v410_v48, 0.0 }
 0x117   : > { %v518_v56 = vshrl.u32 %v1867_v44, 16  ;;  %v521_v57 = vshll.u32 %v1867_v44, 16  ;;  %v1865_v60 = vpack.c.bf16 %v433_v46, %v433_v46  ;;  %v436_v62 = vmax.f32 %v426_v49, 0.0 }
 0x118   : > { %v488_v63 = vrot.slane %v486_v54, 7  ;;  %v2318_v4 = vadd.f32 %v1768_v18, %v401_v50  ;;  %v2320_v5 = vadd.f32 %v1768_v18, %v417_v51  ;;  %v470_v8 = vshrl.u32 %v1861_v59, 16  ;;  %v574_v54 = vld [vmem:[#allocation2 + $0x20] sm:$0xf] }
 0x119   : > { %v520_v2 = vrot.slane %v518_v56, 7  ;;  %v473_v9 = vshll.u32 %v1861_v59, 16  ;;  %v502_v10 = vshrl.u32 %v1865_v60, 16  ;;  %v505_v11 = vshll.u32 %v1865_v60, 16  ;;  %v598_v56 = vld [vmem:[#allocation2 + $0x40] sm:$0xf] }
 0x11a   : > { %v491_v12 = vor.u32 %v489_v55, %v488_v63  ;;  %v492_v13 = vrot.slane %v488_v63, 4  ;;  %v472_v17 = vrot.slane %v470_v8, 7  ;;  %v1864_v18 = vpack.c.bf16 %v432_v61, %v432_v61  ;;  %v577_v55 = vld [vmem:[#allocation2 + $0x24] sm:$0x1]  ;;  %v2346_v61 = vld [vmem:[#allocation2 + $0x48] sm:$0xe] }
 0x11b   : > { %v523_v14 = vor.u32 %v521_v57, %v520_v2  ;;  %v524_v16 = vrot.slane %v520_v2, 4  ;;  %v504_v20 = vrot.slane %v502_v10, 7  ;;  %v1868_v21 = vpack.c.bf16 %v436_v62, %v436_v62  ;;  %2933 = vst [vmem:[#allocation10_spill] sm:$0xff] %v2346_v61  ;;  %v601_v62 = vld [vmem:[#allocation2 + $0x44] sm:$0x1] }
 0x11c   : > { %v569_v22 = vsel %vm2314_vm7, %v491_v12, %v568_v58  ;;  %v572_v25 = vsel %vm2324_vm8, %v492_v13, %v571_v1  ;;  %v475_v35 = vor.u32 %v473_v9, %v472_v17  ;;  %v476_v36 = vrot.slane %v472_v17, 4  ;;  %v565_v17 = vld [vmem:[#allocation2 + $0x14] sm:$0x1] }
 0x11d   : > { %v593_v26 = vsel %vm2314_vm7, %v523_v14, %v592_v3  ;;  %v596_v29 = vsel %vm2324_vm8, %v524_v16, %v595_v7  ;;  %570 = vst [vmem:[#allocation2 + $0x18] sm:$0xf] %v569_v22  ;;  %573 = vst [vmem:[#allocation2 + $0x1c] sm:$0x1] %v572_v25  ;;  %v507_v37 = vor.u32 %v505_v11, %v504_v20  ;;  %v508_v38 = vrot.slane %v504_v20, 4  ;;  %v1997_v25 = vld [vmem:[%s2912_s2] sm:$0xff]  }
 0x11e   : > { %594 = vst [vmem:[#allocation2 + $0x38] sm:$0xf] %v593_v26  ;;  %597 = vst [vmem:[#allocation2 + $0x3c] sm:$0x1] %v596_v29  ;;  %v494_v43 = vshrl.u32 %v1864_v18, 16  ;;  %v497_v44 = vshll.u32 %v1864_v18, 16  ;;  %v554_v48 = vsel %vm2314_vm7, %v475_v35, %v553_v19  ;;  %v560_v49 = vsel %vm2324_vm8, %v476_v36, %v559_v30 }
 0x11f   : > { %v526_v45 = vshrl.u32 %v1868_v21, 16  ;;  %v529_v46 = vshll.u32 %v1868_v21, 16  ;;  %v581_v50 = vsel %vm2314_vm7, %v507_v37, %v580_v33  ;;  %v584_v51 = vsel %vm2324_vm8, %v508_v38, %v583_v34  ;;  %555 = vst [vmem:[#allocation2 + $0x8] sm:$0xf] %v554_v48  ;;  %561 = vst [vmem:[#allocation2 + $0xc] sm:$0x1] %v560_v49 }
 0x120   : > { %582 = vst [vmem:[#allocation2 + $0x28] sm:$0xf] %v581_v50  ;;  %585 = vst [vmem:[#allocation2 + $0x2c] sm:$0x1] %v584_v51  ;;  %v496_v57 = vrot.slane %v494_v43, 7  ;;  %v430_v59 = vmax.f32 %v2318_v4, 0.0  ;;  %v2396_v34 = vsel %vm2382_vm13, %v1782_v39, %v764_v40 }
 0x121   : > { %v528_v58 = vrot.slane %v526_v45, 7  ;;  %v434_v60 = vmax.f32 %v2320_v5, 0.0  ;;  %v2351_v63 = vrot.slane %v630_v41, 4  ;;  %v2355_v1 = vrot.slane %v633_v42, 5  ;;  %v562_v16 = vld [vmem:[#allocation2 + $0x10] sm:$0xf] }
 0x122   : > { %v2360_v2 = vrot.slane %v1100_v52, 4  ;;  %v2364_v3 = vrot.slane %v1103_v53, 5  ;;  %v499_v4 = vor.u32 %v497_v44, %v496_v57  ;;  %v500_v5 = vrot.slane %v496_v57, 4  ;;  %v586_v19 = vld [vmem:[#allocation2 + $0x30] sm:$0xf] }
 0x123   : > { %v531_v7 = vor.u32 %v529_v46, %v528_v58  ;;  %v532_v8 = vrot.slane %v528_v58, 4  ;;  %v1862_v23 = vpack.c.bf16 %v430_v59, %v430_v59  ;;  %v1866_v24 = vpack.c.bf16 %v434_v60, %v434_v60  ;;  %v589_v35 = vld [vmem:[#allocation2 + $0x34] sm:$0x1] }
 0x124   : > { %2934 = vst [vmem:[#allocation11_spill] sm:$0xff] %v2360_v2  ;;  %2935 = vst [vmem:[#allocation12_spill] sm:$0xff] %v2364_v3  ;;  %v575_v9 = vsel %vm2314_vm7, %v499_v4, %v574_v54  ;;  %v578_v31 = vsel %vm2324_vm8, %v500_v5, %v577_v55  ;;  %v796_v53 = vld [vmem:[#allocation2 + $0x18] sm:$0xf] }
 0x125   : > { %v599_v32 = vsel %vm2314_vm7, %v531_v7, %v598_v56  ;;  %v602_v52 = vsel %vm2324_vm8, %v532_v8, %v601_v62  ;;  %v2376_v10 = vld [vmem:[#allocation2 + $0x18] sm:$0xf]  ;;  %576 = vst [vmem:[#allocation2 + $0x20] sm:$0xf] %v575_v9  ;;  %579 = vst [vmem:[#allocation2 + $0x24] sm:$0x1] %v578_v31 }
 0x126   : > { %600 = vst [vmem:[#allocation2 + $0x40] sm:$0xf] %v599_v32  ;;  %603 = vst [vmem:[#allocation2 + $0x44] sm:$0x1] %v602_v52  ;;  %v478_v11 = vshrl.u32 %v1862_v23, 16  ;;  %v481_v12 = vshll.u32 %v1862_v23, 16 }
 0x127   : > { %v510_v13 = vshrl.u32 %v1866_v24, 16  ;;  %v513_v14 = vshll.u32 %v1866_v24, 16  ;;  %v839_v20 = vshrl.u32 %v796_v53, 16  ;;  %v842_v18 = vshll.u32 %v796_v53, 16  ;;  %v2386_v30 = vld [vmem:[#allocation2 + $0x8] sm:$0xf] }
 0x128   : > { %v1010_v21 = vshrl.u32 %v2376_v10, 16  ;;  %v1013_v22 = vshll.u32 %v2376_v10, 16  ;;  %v480_v26 = vrot.slane %v478_v11, 7  ;;  %v2388_v33 = vld [vmem:[#allocation2 + $0x28] sm:$0xf]  ;;  %v811_v38 = vshrl.u32 %v2386_v30, 16 }
 0x129   : > { %v512_v29 = vrot.slane %v510_v13, 7  ;;  %v841_v36 = vrot.slane %v839_v20, 4  ;;  %v844_v37 = vrot.slane %v842_v18, 5  ;;  %v814_v43 = vshll.u32 %v2386_v30, 16  ;;  %v800_v7 = vld [vmem:[#allocation2 + $0x38] sm:$0xf] }
 0x12a   : > { %v483_v44 = vor.u32 %v481_v12, %v480_v26  ;;  %v484_v45 = vrot.slane %v480_v26, 4  ;;  %v813_v50 = vrot.slane %v811_v38, 4  ;;  %v1038_v28 = vshrl.u32 %v2388_v33, 16  ;;  %v2432_v12 = vld [vmem:[#allocation2 + $0x28] sm:$0xf] }
 0x12b   : > { %v515_v46 = vor.u32 %v513_v14, %v512_v29  ;;  %v516_v48 = vrot.slane %v512_v29, 4  ;;  %v845_v49 = vor.u32 %v844_v37, %v841_v36  ;;  %v816_v27 = vrot.slane %v814_v43, 5 }
 0x12c   : > { %v563_v39 = vsel %vm2314_vm7, %v483_v44, %v562_v16  ;;  %v566_v40 = vsel %vm2324_vm8, %v484_v45, %v565_v17  ;;  %v797_v56 = vld [vmem:[#allocation2 + $0x20] sm:$0xf]  ;;  %v2417_v0 = vrot.slane %v1038_v28, 4  ;;  %v1041_v24 = vshll.u32 %v2388_v33, 16 }
 0x12d   : > { %v587_v51 = vsel %vm2314_vm7, %v515_v46, %v586_v19  ;;  %v590_v54 = vsel %vm2324_vm8, %v516_v48, %v589_v35  ;;  %564 = vst [vmem:[#allocation2 + $0x10] sm:$0xf] %v563_v39  ;;  %567 = vst [vmem:[#allocation2 + $0x14] sm:$0x1] %v566_v40  ;;  %v2415_v57 = vrot.slane %v845_v49, 4  ;;  %v817_v58 = vor.u32 %v816_v27, %v813_v50 }
 0x12e   : > { %588 = vst [vmem:[#allocation2 + $0x30] sm:$0xf] %v587_v51  ;;  %591 = vst [vmem:[#allocation2 + $0x34] sm:$0x1] %v590_v54  ;;  %v981_v59 = vld [vmem:[#allocation2 + $0x20] sm:$0xf]  ;;  %v1819_v60 = vcombine.low %v796_v53, %v797_v56 }
 0x12f   : > { %v853_v62 = vshrl.u32 %v797_v56, 16  ;;  %v856_v4 = vshll.u32 %v797_v56, 16  ;;  %v1024_v5 = vshrl.u32 %v981_v59, 16  ;;  %v2423_v8 = vrot.slane %v817_v58, 4  ;;  %v801_v31 = vld [vmem:[#allocation2 + $0x40] sm:$0xf] }
 0x130   : > { %v1027_v23 = vshll.u32 %v981_v59, 16  ;;  %v1831_v9 = vcombine.low %v981_v59, %v2388_v33  ;;  %1245 = vrot.lane.b32.xlu1 %v1819_v60, %s2098_s19  ;;  %v2430_v53 = vrot.slane %v1010_v21, 4  ;;  %v2436_v14 = vrot.slane %v1041_v24, 5  ;;  %v985_v36 = vld [vmem:[#allocation2 + $0x40] sm:$0xf] }
 0x131   : > { %v855_v32 = vrot.slane %v853_v62, 4  ;;  %v858_v52 = vrot.slane %v856_v4, 5  ;;  %v2428_v11 = vrot.slane %v1024_v5, 4  ;;  %v2438_v16 = vrot.slane %v1013_v22, 5  ;;  %v2458_v54 = vld [vmem:[#allocation2 + $0x38] sm:$0xf] }
 0x132   : > { %v2434_v13 = vrot.slane %v1027_v23, 5  ;;  %v895_v17 = vshrl.u32 %v800_v7, 16  ;;  %v898_v20 = vshll.u32 %v800_v7, 16  ;;  %v909_v18 = vshrl.u32 %v801_v31, 16  ;;  %v2472_v5 = vld [vmem:[#allocation2 + $0xc] sm:$0x1] }
 0x133   : > { %v859_v19 = vor.u32 %v858_v52, %v855_v32  ;;  %v912_v26 = vshll.u32 %v801_v31, 16  ;;  %v1821_v33 = vcombine.low %v800_v7, %v801_v31  ;;  %v867_v35 = vshrl.u32 %v2432_v12, 16  ;;  %v736_v7 = vld [vmem:[#allocation2 + $0x8] sm:$0xe]  ;;  %v2475_v32 = vld [vmem:[#allocation2 + $0x24] sm:$0x1] }
 0x134   : > { %v2440_v29 = vrot.slane %v895_v17, 4  ;;  %v870_v21 = vshll.u32 %v2432_v12, 16  ;;  %v795_v38 = vld [vmem:[#allocation2 + $0x10] sm:$0xf]  ;;  %1313 = vrot.lane.b32.xlu1 %v1831_v9, %s2099_s21  ;;  %v2447_v43 = vrot.slane %v898_v20, 5  ;;  %v1833_v44 = vcombine.low %v985_v36, %v2283_v15 }
 0x135   : > { %v2444_v37 = vrot.slane %v859_v19, 4  ;;  %v979_v22 = vld [vmem:[#allocation2 + $0x10] sm:$0xf]  ;;  %v825_v46 = vshrl.u32 %v795_v38, 16  ;;  %v828_v48 = vshll.u32 %v795_v38, 16  ;;  %v1818_v49 = vcombine.low %v2386_v30, %v795_v38 }
 0x136   : > { %v996_v50 = vshrl.u32 %v979_v22, 16  ;;  %v799_v27 = vld [vmem:[#allocation2 + $0x30] sm:$0xf]  ;;  %v999_v28 = vshll.u32 %v979_v22, 16  ;;  %v1830_v39 = vcombine.low %v979_v22, %v2376_v10  ;;  %v2454_v40 = vrot.slane %v909_v18, 4 }
 0x137   : > { %v2456_v51 = vrot.slane %v912_v26, 5  ;;  %v827_v56 = vrot.slane %v825_v46, 4  ;;  %v830_v15 = vrot.slane %v828_v48, 5  ;;  %1243 = vrot.lane.b32.xlu0 %v1818_v49, %s2098_s19  ;;  %v2463_v59 = vrot.slane %v867_v35, 4  ;;  %v2465_v30 = vld [vmem:[#allocation2 + $0x30] sm:$0xf] }
 0x138   : > { %v2461_v58 = vrot.slane %v996_v50, 4  ;;  %v2467_v60 = vrot.slane %v999_v28, 5  ;;  %1249 = vrot.lane.b32.xlu1 %v1821_v33, %s2098_s19  ;;  %v2470_v10 = vrot.slane %v870_v21, 5  ;;  %v881_v62 = vshrl.u32 %v799_v27, 16  ;;  %v2477_v52 = vld [vmem:[#allocation2 + $0x2c] sm:$0x1] }
 0x139   : > { %v884_v4 = vshll.u32 %v799_v27, 16  ;;  %v831_v23 = vor.u32 %v830_v15, %v827_v56  ;;  %v1820_v24 = vcombine.low %v2432_v12, %v799_v27  ;;  %v1080_v9 = vshrl.u32 %v985_v36, 16  ;;  %v1110_v17 = vld [vmem:[#allocation2 + $0x28] sm:$0xe]  ;;  %v1109_v33 = vld [vmem:[#allocation2 + $0x20] sm:$0xe] }
 0x13a   : > { %v1083_v31 = vshll.u32 %v985_v36, 16  ;;  %v2479_v19 = vrot.slane %v881_v62, 4  ;;  %v1052_v18 = vshrl.u32 %v2465_v30, 16  ;;  %v1055_v26 = vshll.u32 %v2465_v30, 16  ;;  %v2485_v35 = vld [vmem:[#allocation2 + $0x1c] sm:$0x1] }
 0x13b   : > { %v2481_v20 = vrot.slane %v884_v4, 5  ;;  %v924_v21 = vld [vmem:[#allocation2 + $0x18] sm:$0xe]  ;;  %v2487_v12 = vrot.slane %v831_v23, 4  ;;  %1311 = vrot.lane.b32.xlu0 %v1830_v39, %s2099_s21  ;;  %v2490_v36 = vrot.slane %v1080_v9, 4  ;;  %v1066_v22 = vshrl.u32 %v2458_v54, 16 }
 0x13c   : > { %v2492_v38 = vrot.slane %v1083_v31, 5  ;;  %v2495_v46 = vld [vmem:[#allocation2 + $0x24] sm:$0x1]  ;;  %v925_v48 = vld [vmem:[#allocation2 + $0x20] sm:$0xe]  ;;  %1317 = vrot.lane.b32.xlu1 %v1833_v44, %s2099_s21  ;;  %v2498_v49 = vrot.slane %v1052_v18, 4  ;;  %v1832_v28 = vcombine.low %v2465_v30, %v2458_v54 }
 0x13d   : > { %2940 = vst [vmem:[#allocation13_spill] sm:$0xff] %v2481_v20  ;;  %2941 = vst [vmem:[#allocation14_spill] sm:$0xff] %v2490_v36  ;;  %v2500_v50 = vrot.slane %v1055_v26, 5  ;;  %v1069_v27 = vshll.u32 %v2458_v54, 16  ;;  %v2505_v39 = vld [vmem:[#allocation2 + $0x24] sm:$0x1] }
 0x13e   : > { %2942 = vst [vmem:[#allocation15_spill] sm:$0xff] %v2492_v38  ;;  %2943 = vst [vmem:[#allocation16_spill] sm:$0xff] %v2498_v49  ;;  %v739_v56 = vld [vmem:[#allocation2 + $0x20] sm:$0xe]  ;;  %v2507_v15 = vrot.slane %v1066_v22, 4  ;;  %v1783_v62 = vrot.slane %v736_v7, 9 }
 0x13f   : > { %2944 = vst [vmem:[#allocation17_spill] sm:$0xff] %v2500_v50  ;;  %v768_v4 = vrot.slane %v2472_v5, 5  ;;  %v1800_v23 = vrot.slane %v1109_v33, 9  ;;  %v2510_v9 = vld [vmem:[#allocation2 + $0x2c] sm:$0x1]  ;;  %v2512_v18 = vrot.slane %v1069_v27, 5  ;;  %1247 = vrot.lane.b32.xlu0 %v1820_v24, %s2098_s19 }
 0x140   : > { %2945 = vst [vmem:[#allocation18_spill] sm:$0xff] %v2507_v15  ;;  %v740_v44 = vld [vmem:[#allocation2 + $0x28] sm:$0xe]  ;;  %v928_v31 = vld [vmem:[#allocation2 + $0x38] sm:$0xe]  ;;  %v1141_v26 = vrot.slane %v2475_v32, 5 }
 0x141   : > { %2946 = vst [vmem:[#allocation19_spill] sm:$0xff] %v2512_v18  ;;  %v1801_v41 = vrot.slane %v1110_v17, 9  ;;  %v1145_v54 = vrot.slane %v2477_v52, 5  ;;  %v2516_v30 = vld [vmem:[#allocation2 + $0x3c] sm:$0x1]  ;;  %v769_v7 = vsel %vm2382_vm13, %v1783_v62, %v768_v4  ;;  %v1792_v33 = vrot.slane %v924_v21, 9 }
 0x142   : > { %v929_v42 = vld [vmem:[#allocation2 + $0x40] sm:$0xe]  ;;  %v956_v22 = vrot.slane %v2485_v35, 5  ;;  %v1793_v6 = vrot.slane %v925_v48, 9  ;;  %v2522_v45 = vld [vmem:[#allocation2 + $0x44] sm:$0x1]  ;;  %v1814_v17 = vcombine.low %v2396_v34, %v769_v7  ;;  %v1142_v61 = vsel %vm2382_vm13, %v1800_v23, %v1141_v26 }
 0x143   : > { %v2524_v27 = vld [vmem:[#allocation2 + $0xc] sm:$0x1]  ;;  %v1146_v47 = vsel %vm2382_vm13, %v1801_v41, %v1145_v54  ;;  %v960_v24 = vrot.slane %v2495_v46, 5  ;;  %v2532_v18 = vld [vmem:[#allocation2 + $0x14] sm:$0x1]  ;;  %v1786_v4 = vrot.slane %v739_v56, 9  ;;  %1315 = vrot.lane.b32.xlu0 %v1832_v28, %s2099_s21 }
 0x144   : > { %v922_v21 = vld [vmem:[#allocation2 + $0x8] sm:$0xe]  ;;  %v1839_v62 = vcombine.low %v1142_v61, %v1146_v47  ;;  %v957_v48 = vsel %vm2382_vm13, %v1792_v33, %v956_v22  ;;  %v780_v15 = vrot.slane %v2505_v39, 5  ;;  %v923_v2 = vld [vmem:[#allocation2 + $0x10] sm:$0xe]  ;;  %1215 = vrot.lane.b32.xlu1 %v1814_v17, %s2100_s9  ;;  %v1787_v23 = vrot.slane %v740_v44, 9 }
 0x145   : > { %v2537_v34 = vld [vmem:[#allocation2 + $0x14] sm:$0x1]  ;;  %v961_v41 = vsel %vm2382_vm13, %v1793_v6, %v960_v24  ;;  %v784_v26 = vrot.slane %v2510_v9, 5  ;;  %v1796_v54 = vrot.slane %v928_v31, 9  ;;  %v2543_v47 = vld [vmem:[#allocation2 + $0x1c] sm:$0x1] }
 0x146   : > { %v737_v61 = vld [vmem:[#allocation2 + $0x10] sm:$0xe]  ;;  %v1827_v56 = vcombine.low %v957_v48, %v961_v41  ;;  %v781_v7 = vsel %vm2382_vm13, %v1786_v4, %v780_v15  ;;  %v972_v33 = vrot.slane %v2516_v30, 5  ;;  %v1797_v22 = vrot.slane %v929_v42, 9  ;;  %v738_v17 = vld [vmem:[#allocation2 + $0x18] sm:$0xe] }
 0x147   : > { %v2549_v3 = vld [vmem:[#allocation2 + $0x14] sm:$0x1]  ;;  %v785_v6 = vsel %vm2382_vm13, %v1787_v23, %v784_v26  ;;  %v976_v44 = vrot.slane %v2522_v45, 5  ;;  %v1790_v31 = vrot.slane %v922_v21, 9  ;;  %v948_v24 = vrot.slane %v2524_v27, 5  ;;  %1353 = vrot.lane.b32.xlu0 %v1839_v62, %s2102_s16  ;;  %s1685_s19 = sshll.u32 %s2255_s20, 4  ;;  %s2864_s19 = int_to_ptr.vmem [resolvable:$true] %s1685_s19 }
 0x148   : > { %v2555_v50 = vld [vmem:[#allocation2 + $0x1c] sm:$0x1]  ;;  %v1107_v28 = vld [vmem:[#allocation2 + $0x10] sm:$0xe]  ;;  %v1816_v48 = vcombine.low %v781_v7, %v785_v6  ;;  %v973_v15 = vsel %vm2382_vm13, %v1796_v54, %v972_v33  ;;  %v1791_v4 = vrot.slane %v923_v2, 9  ;;  %v952_v42 = vrot.slane %v2532_v18, 5  ;;  %1285 = vrot.lane.b32.xlu1 %v1827_v56, %s2101_s8 }
 0x149   : > { %v1108_v41 = vld [vmem:[#allocation2 + $0x18] sm:$0xe]  ;;  %v2560_v49 = vld [vmem:[#allocation2 + $0x34] sm:$0x1]  ;;  %v977_v21 = vsel %vm2382_vm13, %v1797_v22, %v976_v44  ;;  %v949_v23 = vsel %vm2382_vm13, %v1790_v31, %v948_v24  ;;  %v1784_v26 = vrot.slane %v737_v61, 9  ;;  %v772_v7 = vrot.slane %v2537_v34, 5 }
 0x14a   : > { %v2568_v6 = vld [vmem:[#allocation2 + $0x3c] sm:$0x1]  ;;  %v741_v2 = vld [vmem:[#allocation2 + $0x30] sm:$0xe]  ;;  %v1829_v54 = vcombine.low %v973_v15, %v977_v21  ;;  %v953_v33 = vsel %vm2382_vm13, %v1791_v4, %v952_v42  ;;  %v1785_v56 = vrot.slane %v738_v17, 9  ;;  %v776_v38 = vrot.slane %v2543_v47, 5 }
 0x14b   : > { %v742_v22 = vld [vmem:[#allocation2 + $0x38] sm:$0xe]  ;;  %v2574_v44 = vld [vmem:[#allocation2 + $0x2c] sm:$0x1]  ;;  %v1826_v31 = vcombine.low %v949_v23, %v953_v33  ;;  %v773_v61 = vsel %vm2382_vm13, %v1784_v26, %v772_v7  ;;  %v1798_v24 = vrot.slane %v1107_v28, 9  ;;  %v1133_v36 = vrot.slane %v2549_v3, 5  ;;  %1219 = vrot.lane.b32.xlu0 %v1816_v48, %s2100_s9 }
 0x14c   : > { %v2579_v20 = vld [vmem:[#allocation2 + $0x34] sm:$0x1]  ;;  %v926_v62 = vld [vmem:[#allocation2 + $0x28] sm:$0xe]  ;;  %v777_v15 = vsel %vm2382_vm13, %v1785_v56, %v776_v38  ;;  %v1799_v4 = vrot.slane %v1108_v41, 9  ;;  %v1137_v17 = vrot.slane %v2555_v50, 5  ;;  %1289 = vrot.lane.b32.xlu1 %v1829_v54, %s2101_s8 }
 0x14d   : > { %v1788_v42 = vrot.slane %v741_v2, 9  ;;  %v927_v21 = vld [vmem:[#allocation2 + $0x30] sm:$0xe]  ;;  %v1815_v23 = vcombine.low %v773_v61, %v777_v15  ;;  %v1134_v26 = vsel %vm2382_vm13, %v1798_v24, %v1133_v36  ;;  %v788_v28 = vrot.slane %v2560_v49, 5  ;;  %v2593_v56 = vld [vmem:[#allocation2 + $0x8] sm:$0xf] }
 0x14e   : > { %v1789_v7 = vrot.slane %v742_v22, 9  ;;  %v1138_v33 = vsel %vm2382_vm13, %v1799_v4, %v1137_v17  ;;  %v792_v38 = vrot.slane %v2568_v6, 5  ;;  %v1794_v41 = vrot.slane %v926_v62, 9 }
 0x14f   : > { %v964_v2 = vrot.slane %v2574_v44, 5  ;;  %v1838_v54 = vcombine.low %v1134_v26, %v1138_v33  ;;  %v789_v61 = vsel %vm2382_vm13, %v1788_v42, %v788_v28  ;;  %v1795_v36 = vrot.slane %v927_v21, 9  ;;  %1283 = vrot.lane.b32.xlu0 %v1826_v31, %s2101_s8 }
 0x150   : > { %v968_v24 = vrot.slane %v2579_v20, 5  ;;  %v793_v48 = vsel %vm2382_vm13, %v1789_v7, %v792_v38  ;;  %v848_v15 = vshll.u32 %v2485_v35, 16  ;;  %v862_v62 = vshll.u32 %v2495_v46, 16  ;;  %1217 = vrot.lane.b32.xlu1 %v1815_v23, %s2100_s9 }
 0x151   : > { %v965_v22 = vsel %vm2382_vm13, %v1794_v41, %v964_v2  ;;  %v1817_v4 = vcombine.low %v789_v61, %v793_v48  ;;  %v638_v42 = vshrl.u32 %v2593_v56, 16  ;;  %v641_v21 = vshll.u32 %v2593_v56, 16  ;;  %v2615_v2 = vld [vmem:[#allocation2 + $0x10] sm:$0xf] }
 0x152   : > { %v969_v17 = vsel %vm2382_vm13, %v1795_v36, %v968_v24  ;;  %v850_v28 = vrot.slane %v848_v15, 5  ;;  %v864_v7 = vrot.slane %v862_v62, 5  ;;  %v647_v33 = vshll.u32 %v2472_v5, 16  ;;  %v2625_v24 = vld [vmem:[#allocation2 + $0x18] sm:$0xf] }
 0x153   : > { %v1828_v26 = vcombine.low %v965_v22, %v969_v17  ;;  %v640_v35 = vrot.slane %v638_v42, 4  ;;  %v643_v38 = vrot.slane %v641_v21, 5  ;;  %v2947_v46 = vor.u32 %v2434_v13, %v2428_v11  ;;  %1351 = vrot.lane.b32.xlu0 %v1838_v54, %s2102_s16  ;;  %v2637_v54 = vld [vmem:[#allocation2 + $0x20] sm:$0xf] }
 0x154   : > { %v1033_v41 = vshll.u32 %v2475_v32, 16  ;;  %v851_v61 = vsel %vm2411_vm14, %v2415_v57, %v850_v28  ;;  %v865_v31 = vsel %vm2411_vm14, %v2444_v37, %v864_v7  ;;  %v649_v36 = vrot.slane %v647_v33, 5  ;;  %1221 = vrot.lane.b32.xlu1 %v1817_v4, %s2100_s9 }
 0x155   : > { %v1031_v23 = vrot.slane %v2947_v46, 4  ;;  %v1044_v5 = vor.u32 %v2436_v14, %v2417_v0  ;;  %v1823_v11 = vcombine.low %v851_v61, %v865_v31  ;;  %v644_v13 = vor.u32 %v643_v38, %v640_v35  ;;  %v2645_v35 = vld [vmem:[#allocation2 + $0x28] sm:$0xf] }
 0x156   : > { %v1035_v32 = vrot.slane %v1033_v41, 5  ;;  %v1047_v48 = vshll.u32 %v2477_v52, 16  ;;  %v652_v22 = vshrl.u32 %v2615_v2, 16  ;;  %v655_v37 = vshll.u32 %v2615_v2, 16 }
 0x157   : > { %v1045_v57 = vrot.slane %v1044_v5, 4  ;;  %v661_v15 = vshll.u32 %v2537_v34, 16  ;;  %v645_v62 = vrot.slane %v644_v13, 4  ;;  %v666_v4 = vshrl.u32 %v2625_v24, 16  ;;  %1287 = vrot.lane.b32.xlu0 %v1828_v26, %s2101_s8 }
 0x158   : > { %v1036_v0 = vsel %vm2411_vm14, %v1031_v23, %v1035_v32  ;;  %v1049_v14 = vrot.slane %v1047_v48, 5  ;;  %v654_v17 = vrot.slane %v652_v22, 4  ;;  %v657_v42 = vrot.slane %v655_v37, 5  ;;  %1265 = vrot.lane.b32.xlu1 %v1823_v11, %s2103_s11 }
 0x159   : > { %v663_v21 = vrot.slane %v661_v15, 5  ;;  %v669_v52 = vshll.u32 %v2625_v24, 16  ;;  %v650_v34 = vsel %vm2411_vm14, %v645_v62, %v649_v36  ;;  %v668_v7 = vrot.slane %v666_v4, 4 }
 0x15a   : > { %v1050_v28 = vsel %vm2411_vm14, %v1045_v57, %v1049_v14  ;;  %v675_v33 = vshll.u32 %v2543_v47, 16  ;;  %v2948_v38 = vsel %vm2411_vm14, %v2351_v63, %v2355_v1  ;;  %v658_v41 = vor.u32 %v657_v42, %v654_v17 }
 0x15b   : > { %v1810_v46 = vcombine.low %v2948_v38, %v650_v34  ;;  %v1835_v23 = vcombine.low %v1036_v0, %v1050_v28  ;;  %v671_v61 = vrot.slane %v669_v52, 5  ;;  %v680_v36 = vshrl.u32 %v2637_v54, 16 }
 0x15c   : > { %v677_v31 = vrot.slane %v675_v33, 5  ;;  %v683_v5 = vshll.u32 %v2637_v54, 16  ;;  %v689_v47 = vshll.u32 %v2505_v39, 16  ;;  %v659_v11 = vrot.slane %v658_v41, 4 }
 0x15d   : > { %v672_v13 = vor.u32 %v671_v61, %v668_v7  ;;  %v694_v26 = vshrl.u32 %v2645_v35, 16  ;;  %v697_v32 = vshll.u32 %v2645_v35, 16  ;;  %1333 = vrot.lane.b32.xlu1 %v1835_v23, %s2104_s18  ;;  %v682_v63 = vrot.slane %v680_v36, 4  ;;  %1195 = vrot.lane.b32.xlu0 %v1810_v46, %s2105_s12  ;;  %v2682_v23 = vld [vmem:[#allocation2 + $0x30] sm:$0xf] }
 0x15e   : > { %v685_v1 = vrot.slane %v683_v5, 5  ;;  %v691_v48 = vrot.slane %v689_v47, 5  ;;  %v703_v57 = vshll.u32 %v2510_v9, 16  ;;  %v664_v39 = vsel %vm2411_vm14, %v659_v11, %v663_v21  ;;  %v2694_v47 = vld [vmem:[#allocation2 + $0x38] sm:$0xf] }
 0x15f   : > { %v673_v22 = vrot.slane %v672_v13, 4  ;;  %v696_v37 = vrot.slane %v694_v26, 4  ;;  %v699_v15 = vrot.slane %v697_v32, 5  ;;  %v820_v14 = vshll.u32 %v2524_v27, 16 }
 0x160   : > { %v686_v62 = vor.u32 %v685_v1, %v682_v63  ;;  %v705_v0 = vrot.slane %v703_v57, 5  ;;  %v834_v4 = vshll.u32 %v2532_v18, 16  ;;  %v901_v9 = vor.u32 %v2447_v43, %v2440_v29 }
 0x161   : > { %v678_v17 = vsel %vm2411_vm14, %v673_v22, %v677_v31  ;;  %v700_v42 = vor.u32 %v699_v15, %v696_v37  ;;  %v904_v52 = vshll.u32 %v2516_v30, 16  ;;  %v822_v28 = vrot.slane %v820_v14, 5 }
 0x162   : > { %v1811_v34 = vcombine.low %v664_v39, %v678_v17  ;;  %v687_v21 = vrot.slane %v686_v62, 4  ;;  %v836_v7 = vrot.slane %v834_v4, 5  ;;  %v902_v38 = vrot.slane %v901_v9, 4  ;;  %v2949_v9 = vld [vmem:[#allocation13_spill] sm:$0xff] }
 0x163   : > { %v701_v33 = vrot.slane %v700_v42, 4  ;;  %v906_v46 = vrot.slane %v904_v52, 5  ;;  %v915_v27 = vor.u32 %v2456_v51, %v2454_v40  ;;  %v823_v29 = vsel %vm2411_vm14, %v2423_v8, %v822_v28  ;;  %v2951_v28 = vld [vmem:[#allocation15_spill] sm:$0xff] }
 0x164   : > { %1197 = vrot.lane.b32.xlu0 %v1811_v34, %s2105_s12  ;;  %v692_v18 = vsel %vm2411_vm14, %v687_v21, %v691_v48  ;;  %v837_v43 = vsel %vm2411_vm14, %v2487_v12, %v836_v7  ;;  %v918_v30 = vshll.u32 %v2522_v45, 16  ;;  %v1002_v8 = vor.u32 %v2467_v60, %v2461_v58 }
 0x165   : > { %v706_v40 = vsel %vm2411_vm14, %v701_v33, %v705_v0  ;;  %v1822_v51 = vcombine.low %v823_v29, %v837_v43  ;;  %v907_v41 = vsel %vm2411_vm14, %v902_v38, %v906_v46  ;;  %v916_v61 = vrot.slane %v915_v27, 4  ;;  %v2953_v27 = vld [vmem:[#allocation17_spill] sm:$0xff] }
 0x166   : > { %v1812_v31 = vcombine.low %v692_v18, %v706_v40  ;;  %v920_v36 = vrot.slane %v918_v30, 5  ;;  %v1005_v5 = vshll.u32 %v2549_v3, 16  ;;  %v1016_v45 = vor.u32 %v2438_v16, %v2430_v53  ;;  %v2954_v30 = vld [vmem:[#allocation12_spill] sm:$0xff]  ;;  %v2955_v40 = vld [vmem:[#allocation11_spill] sm:$0xff] }
 0x167   : > { %v1019_v12 = vshll.u32 %v2555_v50, 16  ;;  %v708_v11 = vshrl.u32 %v2682_v23, 16  ;;  %v711_v13 = vshll.u32 %v2682_v23, 16  ;;  %v1003_v60 = vrot.slane %v1002_v8, 4 }
 0x168   : > { %1199 = vrot.lane.b32.xlu1 %v1812_v31, %s2105_s12  ;;  %1263 = vrot.lane.b32.xlu0 %v1822_v51, %s2103_s11  ;;  %v921_v58 = vsel %vm2411_vm14, %v916_v61, %v920_v36  ;;  %v1007_v3 = vrot.slane %v1005_v5, 5  ;;  %v717_v26 = vshll.u32 %v2560_v49, 16  ;;  %v1017_v16 = vrot.slane %v1016_v45, 4  ;;  %v991_v51 = vld [vmem:[#allocation2 + $0x34] sm:$0x1] }
 0x169   : > { %v1825_v53 = vcombine.low %v907_v41, %v921_v58  ;;  %v1021_v50 = vrot.slane %v1019_v12, 5  ;;  %v710_v32 = vrot.slane %v708_v11, 4  ;;  %v713_v1 = vrot.slane %v711_v13, 5  ;;  %v1113_v41 = vld [vmem:[#allocation2 + $0x40] sm:$0xe]  ;;  %v2956_v11 = vld [vmem:[#allocation18_spill] sm:$0xff] }
 0x16a   : > { %v1008_v63 = vsel %vm2411_vm14, %v1003_v60, %v1007_v3  ;;  %v719_v48 = vrot.slane %v717_v26, 5  ;;  %v722_v57 = vshrl.u32 %v2694_v47, 16  ;;  %v725_v22 = vshll.u32 %v2694_v47, 16  ;;  %v992_v36 = vld [vmem:[#allocation2 + $0x3c] sm:$0x1]  ;;  %v2957_v13 = vld [vmem:[#allocation19_spill] sm:$0xff] }
 0x16b   : > { %v1022_v39 = vsel %vm2411_vm14, %v1017_v16, %v1021_v50  ;;  %v731_v37 = vshll.u32 %v2568_v6, 16  ;;  %v873_v49 = vor.u32 %v2470_v10, %v2463_v59  ;;  %v714_v62 = vor.u32 %v713_v1, %v710_v32  ;;  %v993_v59 = vld [vmem:[#allocation2 + $0x44] sm:$0x1]  ;;  %v2950_v10 = vld [vmem:[#allocation14_spill] sm:$0xff]  ;;  %v1111_v3 = vld [vmem:[#allocation2 + $0x30] sm:$0xe] }
 0x16c   : > { %1269 = vrot.lane.b32.xlu1 %v1825_v53, %s2103_s11  ;;  %v1834_v15 = vcombine.low %v1008_v63, %v1022_v39  ;;  %v724_v0 = vrot.slane %v722_v57, 4  ;;  %v876_v14 = vshll.u32 %v2574_v44, 16  ;;  %v727_v4 = vrot.slane %v725_v22, 5  ;;  %v2952_v44 = vld [vmem:[#allocation16_spill] sm:$0xff]  ;;  %v1112_v32 = vld [vmem:[#allocation2 + $0x38] sm:$0xe] }
 0x16d   : > { %v733_v17 = vrot.slane %v731_v37, 5  ;;  %v874_v42 = vrot.slane %v873_v49, 4  ;;  %v887_v52 = vor.u32 %v2949_v9, %v2479_v19  ;;  %v715_v34 = vrot.slane %v714_v62, 4 }
 0x16e   : > { %1331 = vrot.lane.b32.xlu0 %v1834_v15, %s2104_s18  ;;  %v878_v6 = vrot.slane %v876_v14, 5  ;;  %v890_v21 = vshll.u32 %v2579_v20, 16  ;;  %v1086_v7 = vor.u32 %v2951_v28, %v2950_v10  ;;  %v728_v33 = vor.u32 %v727_v4, %v724_v0  ;;  %v1993_v15 = vld [vmem:[%s2912_s2 + $0x10] ss:$0 sps:$4 sm:$0x33]  }
 0x16f   : > { %v888_v38 = vrot.slane %v887_v52, 4  ;;  %v1089_v46 = vshll.u32 %v993_v59, 16  ;;  %v1058_v18 = vor.u32 %v2953_v27, %v2952_v44  ;;  %v720_v29 = vsel %vm2411_vm14, %v715_v34, %v719_v48  ;;  %v2958_v34 = vld [vmem:[#allocation9_spill] sm:$0xff]  ;;  %1923 = vmatprep.subr.msk.bf16.mxu1 %vm1470_vm15, %v1993_v15 }
 0x170   : > { %v892_v19 = vrot.slane %v890_v21, 5  ;;  %v1087_v43 = vrot.slane %v1086_v7, 4  ;;  %v1106_v20 = vsel %vm2411_vm14, %v2955_v40, %v2954_v30  ;;  %v729_v61 = vrot.slane %v728_v33, 4  ;;  %v2960_v21 = vld [vmem:[#allocation10_spill] sm:$0xff] }
 0x171   : > { %v1091_v31 = vrot.slane %v1089_v46, 5  ;;  %v1059_v8 = vrot.slane %v1058_v18, 4  ;;  %v1061_v5 = vshll.u32 %v991_v51, 16  ;;  %v879_v45 = vsel %vm2411_vm14, %v874_v42, %v878_v6 }
 0x172   : > { %v893_v12 = vsel %vm2411_vm14, %v888_v38, %v892_v19  ;;  %v1072_v58 = vor.u32 %v2957_v13, %v2956_v11  ;;  %v1075_v60 = vshll.u32 %v992_v36, 16  ;;  %v734_v26 = vsel %vm2411_vm14, %v729_v61, %v733_v17  ;;  %v1996_v17 = vld [vmem:[%s2912_s2 + $0x8] sm:$0xff]  }
 0x173   : > { %v1824_v53 = vcombine.low %v879_v45, %v893_v12  ;;  %v1063_v16 = vrot.slane %v1061_v5, 5  ;;  %v1804_v50 = vrot.slane %v1113_v41, 9  ;;  %v1813_v63 = vcombine.low %v720_v29, %v734_v26  ;;  %v1999_v12 = vld [vmem:[#allocation2] sm:$0xf] }
 0x174   : > { %v1092_v1 = vsel %vm2411_vm14, %v1087_v43, %v1091_v31  ;;  %v1073_v48 = vrot.slane %v1072_v58, 4  ;;  %v1077_v57 = vrot.slane %v1075_v60, 5  ;;  %v1157_v22 = vrot.slane %v993_v59, 5 }
 0x175   : > { %1267 = vrot.lane.b32.xlu0 %v1824_v53, %s2103_s11  ;;  %v1064_v39 = vsel %vm2411_vm14, %v1059_v8, %v1063_v16  ;;  %v1802_v37 = vrot.slane %v1111_v3, 9  ;;  %v1149_v49 = vrot.slane %v991_v51, 5  ;;  %1201 = vrot.lane.b32.xlu1 %v1813_v63, %s2105_s12  ;;  %v1803_v0 = vrot.slane %v1112_v32, 9  ;;  %s2106_s11 = smov [#allocation6]  }
 0x176   : > { %v1078_v62 = vsel %vm2411_vm14, %v1073_v48, %v1077_v57  ;;  %v1153_v14 = vrot.slane %v992_v36, 5  ;;  %v1837_v42 = vcombine.low %v1092_v1, %v1106_v20  ;;  %v1158_v55 = vsel %vm2382_vm13, %v1804_v50, %v1157_v22 }
 0x177   : > { %v1836_v4 = vcombine.low %v1064_v39, %v1078_v62  ;;  %v1150_v9 = vsel %vm2382_vm13, %v1802_v37, %v1149_v49  ;;  %v2959_v6 = vrot.slane %v2958_v34, 5  ;;  %v2961_v59 = vrot.slane %v2960_v21, 9 }
 0x178   : > { %v1154_v52 = vsel %vm2382_vm13, %v1803_v0, %v1153_v14  ;;  %v1807_v28 = vcombine.low %v2615_v2, %v2625_v24  ;;  %v1472_v7 = vsel %vm1470_vm15, %v1993_v15, 0  ;;  %v1808_v33 = vcombine.low %v2637_v54, %v2645_v35 }
 0x179   : > { %1335 = vrot.lane.b32.xlu0 %v1836_v4, %s2104_s18  ;;  %v1162_v10 = vsel %vm2382_vm13, %v2961_v59, %v2959_v6  ;;  %1337 = vrot.lane.b32.xlu1 %v1837_v42, %s2104_s18  ;;  %v1840_v38 = vcombine.low %v1150_v9, %v1154_v52  ;;  %v1809_v46 = vcombine.low %v2682_v23, %v2694_v47  ;;  %vm1425_vm7 = vcmask 261120   ;;  %s2032_s18 = sshll.u32 %s2106_s11, 4  ;;  %s2033_s18 = int_to_ptr.vmem [resolvable:$false] %s2032_s18 }
 0x17a   : > { %1898 = vmatpush3.bf16.msra.mxu1 %v1472_v7  ;;  %v1841_v44 = vcombine.low %v1158_v55, %v1162_v10  ;;  %v1806_v11 = vcombine.low %v1999_v12, %v2593_v56  ;;  %vm1461_vm8 = vcmask 293888   ;;  %s2034_s12 = scalar_lea.vmem %s2033_s18, 2048  ;;  %p2035_p7 = scmp.lt.s32.totalorder %s2864_s19, %s2033_s18 }
 0x17b   : > { %1899 = vmatprep.subr.bf16.mxu1 %v1996_v17 }
 0x17d   : > { %1355 = vrot.lane.b32.xlu0 %v1840_v38, %s2102_s16  ;;  %1357 = vrot.lane.b32.xlu1 %v1841_v44, %s2102_s16  ;;  %s2860_s16 = scalar_lea.hbm %s2917_s7, %s1869_s29 }
 0x17e   : > { %1900 = vmatpush3.bf16.msra.mxu1 %v1996_v17 }
 0x17f   : > { %1901 = vmatprep.subr.bf16.mxu1 %v1997_v25 }
 0x182   : > { %1902 = vmatpush3.bf16.msra.mxu1 %v1997_v25 }
 0x1a2   : > { %v1246_v2 = vpop.permute.xlu1 %1245 }
 0x1a6   : > { %v1314_v24 = vpop.permute.xlu1 %1313 }
 0x1a9   : > { %v1244_v54 = vpop.permute.xlu0 %1243 }
 0x1aa   : > { %v1250_v35 = vpop.permute.xlu1 %1249 }
 0x1ad   : > { %v1312_v27 = vpop.permute.xlu0 %1311 }
 0x1ae   : > { %v2777_v18 = vpop.permute.xlu1 %1317 }
 0x1b1   : > { %v1248_v29 = vpop.permute.xlu0 %1247 }
 0x1b5   : > { %v1316_v43 = vpop.permute.xlu0 %1315 }
 0x1b6   : > { %v1216_v19 = vpop.permute.xlu1 %1215 }
 0x1b9   : > { %v1354_v40 = vpop.permute.xlu0 %1353 }
 0x1ba   : > { %v1286_v30 = vpop.permute.xlu1 %1285 }
 0x1bd   : > { %v1220_v51 = vpop.permute.xlu0 %1219 }
 0x1be   : > { %v1290_v20 = vpop.permute.xlu1 %1289 }
 0x1c1   : > { %v1284_v61 = vpop.permute.xlu0 %1283 }
 0x1c2   : > { %v1218_v41 = vpop.permute.xlu1 %1217 }
 0x1c5   : > { %v1352_v31 = vpop.permute.xlu0 %1351 }
 0x1c6   : > { %v1222_v36 = vpop.permute.xlu1 %1221 }
 0x1c9   : > { %v1288_v8 = vpop.permute.xlu0 %1287 }
 0x1ca   : > { %v1266_v5 = vpop.permute.xlu1 %1265 }
 0x1cf   : > { %v1196_v45 = vpop.permute.xlu0 %1195  ;;  %v1334_v58 = vpop.permute.xlu1 %1333 }
 0x1d0   : > { %v1362_v13 = vsel %vm1359_vm0, %v1806_v11, %v1196_v45 }
 0x1d1   : > { %v1374_v3 = vsel %vm1372_vm1, %v1362_v13, %v1216_v19 }
 0x1d2   : > { %v1383_v32 = vsel %vm1381_vm3, %v1374_v3, %v1244_v54  ;;  %v1551_v54 = vld [vmem:[%s2913_s3] sm:$0x3] }
 0x1d3   : > { %1924 = vmatprep.subr.msk.bf16.mxu0 %vm1470_vm15, %v1551_v54 }
 0x1d6   : > { %v1198_v60 = vpop.permute.xlu0 %1197 }
 0x1d7   : > { %v1365_v26 = vsel %vm1359_vm0, %v1807_v28, %v1198_v60 }
 0x1d8   : > { %v1376_v53 = vsel %vm1372_vm1, %v1365_v26, %v1218_v41 }
 0x1d9   : > { %v1385_v16 = vsel %vm1381_vm3, %v1376_v53, %v1246_v2 }
 0x1da   : > { %v1393_v50 = vsel %vm351_vm2, %v1385_v16, %v1266_v5  ;;  %v1264_v56 = vpop.permute.xlu0 %1263  ;;  %v1200_v48 = vpop.permute.xlu1 %1199 }
 0x1db   : > { %v1402_v63 = vsel %vm1398_vm4, %v1393_v50, %v1286_v30  ;;  %v1391_v1 = vsel %vm351_vm2, %v1383_v32, %v1264_v56  ;;  %v1368_v15 = vsel %vm1359_vm0, %v1808_v33, %v1200_v48 }
 0x1dc   : > { %v1400_v57 = vsel %vm1398_vm4, %v1391_v1, %v1284_v61  ;;  %v1411_v39 = vsel %vm1407_vm5, %v1402_v63, %v1314_v24  ;;  %v1378_v17 = vsel %vm1372_vm1, %v1368_v15, %v1220_v51  ;;  %v1850_v1 = vld [vmem:[%s2916_s6] ss:$0 sm:$0xff] }
 0x1dd   : > { %v1409_v22 = vsel %vm1407_vm5, %v1400_v57, %v1312_v27  ;;  %v1420_v49 = vsel %vm1416_vm6, %v1411_v39, %v1334_v58  ;;  %v1387_v42 = vsel %vm1381_vm3, %v1378_v17, %v1248_v29  ;;  %v1842_v29 = vld [vmem:[%s2915_s5] ss:$0 sm:$0xff] }
 0x1de   : > { %v1270_v0 = vpop.permute.xlu1 %1269  ;;  %v1429_v4 = vsel %vm1425_vm7, %v1420_v49, %v1354_v40  ;;  %v1641_v57 = vld [vmem:[%s2249_s15 + $0x10] sm:$0xff] }
 0x1e0   : > { %v1332_v37 = vpop.permute.xlu0 %1331 }
 0x1e1   : > { %v1418_v62 = vsel %vm1416_vm6, %v1409_v22, %v1332_v37  ;;  %v1639_v37 = vld [vmem:[%s2249_s15] sm:$0xff] }
 0x1e2   : > { %v1427_v14 = vsel %vm1425_vm7, %v1418_v62, %v1352_v31 }
 0x1e3   : > { %1903 = vmatprep.mubr.msk.bf16.mxu1 %vm1461_vm8, %v1427_v14 }
 0x1e4   : > { %1904 = vmatmul.mubr.msk.bf16.vlgmr.msra.gmra.mxu1 %vm1461_vm8, %v1429_v4 }
 0x1e7   : > { %v1268_v9 = vpop.permute.xlu0 %1267  ;;  %v1202_v52 = vpop.permute.xlu1 %1201 }
 0x1e8   : > { %v1395_v55 = vsel %vm351_vm2, %v1387_v42, %v1268_v9  ;;  %v1371_v34 = vsel %vm1359_vm0, %v1809_v46, %v1202_v52  ;;  %v1640_v9 = vld [vmem:[%s2249_s15 + $0x8] sm:$0xff] }
 0x1e9   : > { %v1404_v6 = vsel %vm1398_vm4, %v1395_v55, %v1288_v8  ;;  %v1380_v21 = vsel %vm1372_vm1, %v1371_v34, %v1222_v36 }
 0x1ea   : > { %v1389_v59 = vsel %vm1381_vm3, %v1380_v21, %v1250_v35  ;;  %v1413_v33 = vsel %vm1407_vm5, %v1404_v6, %v1316_v43  ;;  %v1572_v35 = vsel %vm1470_vm15, %v1551_v54, 0 }
 0x1eb   : > { %v1336_v10 = vpop.permute.xlu0 %1335  ;;  %v1397_v28 = vsel %vm351_vm2, %v1389_v59, %v1270_v0  ;;  %v1338_v7 = vpop.permute.xlu1 %1337  ;;  %1912 = vmatpush3.bf16.msra.mxu0 %v1572_v35  ;;  %v1642_v0 = vld [vmem:[%s2249_s15 + $0x18] sm:$0xff]  ;;  %v1644_v35 = vld [vmem:[%s2249_s15 + $0x28] sm:$0xff] }
 0x1ec   : > { %v1406_v38 = vsel %vm1398_vm4, %v1397_v28, %v1290_v20  ;;  %v1422_v47 = vsel %vm1416_vm6, %v1413_v33, %v1336_v10  ;;  %v1645_v28 = vld [vmem:[%s2249_s15 + $0x30] sm:$0xff] }
 0x1ed   : > { %v1415_v25 = vsel %vm1407_vm5, %v1406_v38, %v2777_v18  ;;  %v1643_v38 = vld [vmem:[%s2249_s15 + $0x20] sm:$0xff] }
 0x1ee   : > { %v1424_v23 = vsel %vm1416_vm6, %v1415_v25, %v1338_v7 }
 0x1ef   : > { %v1356_v46 = vpop.permute.xlu0 %1355  ;;  %v1358_v44 = vpop.permute.xlu1 %1357 }
 0x1f0   : > { %v1431_v2 = vsel %vm1425_vm7, %v1422_v47, %v1356_v46  ;;  %v1433_v24 = vsel %vm1425_vm7, %v1424_v23, %v1358_v44  ;;  %v1646_v46 = vld [vmem:[%s2249_s15 + $0x38] sm:$0xff]  ;;  %s2028_s15 = scalar_lea.vmem %s2864_s19, 1024 }
 0x1f1   : > { %1907 = vmatprep.mubr.msk.bf16.mxu1 %vm1461_vm8, %v1431_v2  ;;  %p2029_p12 = scmp.ne.s32.totalorder %s2864_s19, %s2028_s15  ;;  %p2036_p8 = scmp.lt.s32.totalorder %s2034_s12, %s2028_s15 }
 0x1f2   : > { %1908 = vmatmul.mubr.msk.bf16.gmra.mxu1 %vm1461_vm8, %v1433_v24 }
 0x1f3   : > { %p2030_p4 = pnand %p2029_p12, %p2962_p13  ;;  %p2037_p10 = por %p2036_p8, %p2035_p7 }
 0x1f5   : > { %p2031_p5 = pneg %p2030_p4 }
 0x1f7   : > { %p2038_p0 = pnand %p2037_p10, %p2031_p5 }
 0x2a4   : > { %v1905_v27 = vpop.f32.mrf.mxu1 }
 0x2a5   : > { %v1517_v40 = vadd.f32 %v1905_v27, %v1842_v29 }
 0x2a6   : > { %v1508_v18 = vpop.f32.mrf.mxu1 }
 0x2a7   : > { %v1509_v43 = vadd.f32 %v1842_v29, %v1508_v18  ;;  %v1541_v36 = vmax.f32 %v1517_v40, 0.0 }
 0x2a8   : > { %v1906_v19 = vpop.f32.mrf.mxu1 }
 0x2a9   : > { %v1520_v30 = vadd.f32 %v1906_v19, %v1842_v29  ;;  %v1539_v61 = vmax.f32 %v1509_v43, 0.0 }
 0x2aa   : > { %v1511_v20 = vpop.f32.mrf.mxu1 }
 0x2ab   : > { %v1512_v51 = vadd.f32 %v1842_v29, %v1511_v20  ;;  %v1542_v41 = vmax.f32 %v1520_v30, 0.0 }
 0x2ad   : > { %v1540_v31 = vmax.f32 %v1512_v51, 0.0  ;;  %v1548_v5 = vpack.c.bf16 %v1542_v41, %v1541_v36 }
 0x2af   : > { %v1547_v8 = vpack.c.bf16 %v1540_v31, %v1539_v61 }
 0x2b1   : > { %1913 = vmatprep.mubr.msk.bf16.mxu0 %vm1359_vm0, %v1547_v8 }
 0x2b2   : > { %v1909_v45 = vpop.f32.mrf.mxu1  ;;  %1914 = vmatmul.mubr.msk.bf16.vlgmr.msra.gmra.mxu0 %vm1359_vm0, %v1548_v5 }
 0x2b3   : > { %v1533_v60 = vadd.f32 %v1909_v45, %v1842_v29 }
 0x2b4   : > { %v1524_v12 = vpop.f32.mrf.mxu1 }
 0x2b5   : > { %v1525_v13 = vadd.f32 %v1842_v29, %v1524_v12  ;;  %v1545_v32 = vmax.f32 %v1533_v60, 0.0 }
 0x2b6   : > { %v1910_v11 = vpop.f32.mrf.mxu1 }
 0x2b7   : > { %v1536_v58 = vadd.f32 %v1910_v11, %v1842_v29  ;;  %v1543_v16 = vmax.f32 %v1525_v13, 0.0 }
 0x2b8   : > { %v1527_v3 = vpop.f32.mrf.mxu1 }
 0x2b9   : > { %v1528_v26 = vadd.f32 %v1842_v29, %v1527_v3  ;;  %v1546_v53 = vmax.f32 %v1536_v58, 0.0 }
 0x2bb   : > { %v1544_v50 = vmax.f32 %v1528_v26, 0.0  ;;  %v1550_v63 = vpack.c.bf16 %v1546_v53, %v1545_v32 }
 0x2bd   : > { %v1549_v56 = vpack.c.bf16 %v1544_v50, %v1543_v16 }
 0x2bf   : > { %1917 = vmatprep.mubr.msk.bf16.mxu0 %vm1359_vm0, %v1549_v56 }
 0x2c0   : > { %1918 = vmatmul.mubr.msk.bf16.gmra.mxu0 %vm1359_vm0, %v1550_v63 }
 0x372   : > { %v1915_v48 = vpop.f32.mrf.mxu0 }
 0x373   : > { %v1617_v39 = vadd.f32 %v1915_v48, %v1850_v1 }
 0x374   : > { %v1608_v22 = vpop.f32.mrf.mxu0 }
 0x375   : > { %v1649_v49 = vadd.f32 %v1641_v57, %v1617_v39  ;;  %v1609_v15 = vadd.f32 %v1850_v1, %v1608_v22 }
 0x376   : > { %v1916_v62 = vpop.f32.mrf.mxu0 }
 0x377   : > { %v1657_v14 = vmax.f32 %v1649_v49, 0.0  ;;  %v1647_v4 = vadd.f32 %v1639_v37, %v1609_v15  ;;  %v1620_v17 = vadd.f32 %v1916_v62, %v1850_v1 }
 0x378   : > { %v1611_v42 = vpop.f32.mrf.mxu0 }
 0x379   : > { %1665 = vst.msk [vmem:[%s2255_s20 + $0x10] sm:$0xff] %vm351_vm2, %v1657_v14  ;;  %v1655_v52 = vmax.f32 %v1647_v4, 0.0  ;;  %v1650_v55 = vadd.f32 %v1642_v0, %v1620_v17  ;;  %v1612_v34 = vadd.f32 %v1850_v1, %v1611_v42 }
 0x37b   : > { %1663 = vst.msk [vmem:[%s2255_s20] sm:$0xff] %vm351_vm2, %v1655_v52  ;;  %v1658_v6 = vmax.f32 %v1650_v55, 0.0  ;;  %v1648_v21 = vadd.f32 %v1640_v9, %v1612_v34 }
 0x37d   : > { %1666 = vst.msk [vmem:[%s2255_s20 + $0x18] sm:$0xff] %vm351_vm2, %v1658_v6  ;;  %v1656_v59 = vmax.f32 %v1648_v21, 0.0 }
 0x37f   : > { %1664 = vst.msk [vmem:[%s2255_s20 + $0x8] sm:$0xff] %vm351_vm2, %v1656_v59 }
 0x380   : > { %v1919_v10 = vpop.f32.mrf.mxu0 }
 0x381   : > { %v1633_v7 = vadd.f32 %v1919_v10, %v1850_v1 }
 0x382   : > { %v1624_v33 = vpop.f32.mrf.mxu0 }
 0x383   : > { %v1653_v25 = vadd.f32 %v1645_v28, %v1633_v7  ;;  %v1625_v23 = vadd.f32 %v1850_v1, %v1624_v33 }
 0x384   : > { %v1920_v47 = vpop.f32.mrf.mxu0 }
 0x385   : > { %v1661_v44 = vmax.f32 %v1653_v25, 0.0  ;;  %v1651_v2 = vadd.f32 %v1643_v38, %v1625_v23  ;;  %v1636_v24 = vadd.f32 %v1920_v47, %v1850_v1 }
 0x386   : > { %v1627_v54 = vpop.f32.mrf.mxu0 }
 0x387   : > { %1669 = vst.msk [vmem:[%s2255_s20 + $0x30] sm:$0xff] %vm351_vm2, %v1661_v44  ;;  %v1659_v27 = vmax.f32 %v1651_v2, 0.0  ;;  %v1654_v18 = vadd.f32 %v1646_v46, %v1636_v24  ;;  %v1628_v29 = vadd.f32 %v1850_v1, %v1627_v54 }
 0x389   : > { %1667 = vst.msk [vmem:[%s2255_s20 + $0x20] sm:$0xff] %vm351_vm2, %v1659_v27  ;;  %v1662_v19 = vmax.f32 %v1654_v18, 0.0  ;;  %v1652_v43 = vadd.f32 %v1644_v35, %v1628_v29 }
 0x38b   : > { %1670 = vst.msk [vmem:[%s2255_s20 + $0x38] sm:$0xff] %vm351_vm2, %v1662_v19  ;;  %v1660_v30 = vmax.f32 %v1652_v43, 0.0 }
 0x38d   : > { %1668 = vst.msk [vmem:[%s2255_s20 + $0x28] sm:$0xff] %vm351_vm2, %v1660_v30 }
 0x38e   : > { %2041 = shalt.err (!%p2038_p0)
}
 0x38f   : > { %s2042_s20 = scalar_lea.hbm %s2860_s16, 1024  ;;  %s2046_s29 = scalar_lea.hbm %s2917_s7, 2048 }
 0x390   : > { %p2043_p2 = scmp.ne.s32.totalorder %s2860_s16, %s2042_s20  ;;  %p2047_p3 = scmp.lt.s32.totalorder %s2860_s16, %s2917_s7 }
 0x391   : > { %p2048_p6 = scmp.lt.s32.totalorder %s2046_s29, %s2042_s20 }
 0x392   : > { %p2044_p9 = pnand %p2043_p2, %p2962_p13 }
 0x393   : > { %p2049_p11 = por %p2048_p6, %p2047_p3 }
 0x394   : > { %p2045_p1 = pneg %p2044_p9 }
 0x396   : > { %p2050_p12 = pnand %p2049_p11, %p2045_p1 }
 0x398   : > { %2053 = shalt.err (!%p2050_p12)
}
 0x399   : > { %s2107_s15 = smov 128  }
 0x39a   : > { %1927 = dma.vmem_to_hbm [thread:$0]  (%p2962_p13), %s2864_s19, 1024, %s2860_s16, %s1672_s28, %s2107_s15, %s2107_s15, %s2100_s9  }
 0x39b PF: > { %s1700_s11 = sand.u32 1, %s2080_s24   ;;  %p2963_p4 = scmp.ne.s32.totalorder %s2925_s14, 0 }
 0x39c   : > { %p2964_p5 = scmp.ge.s32.totalorder %s2092_s27, 2  ;;  %s1701_s18 = scalar_lea.sflag [#allocation5], %s1700_s11 }
 0x39e   : > { %p1934_p7 = pnand %p2964_p5, %p2963_p4 }
 0x3a0   : > { %p1935_p8 = pneg %p1934_p7 }
 0x3a2   : > { %2075 = dma.done.wait (%p1935_p8), %s1701_s18, 1024  }
 0x3a3   : > { %2077 = vsyncadd (%p1935_p8), %s1701_s18, 4294966272  ;;  %p20_p10 = scmp.ge.s32.totalorder %s2173_s30, 4   ;;  %s2965_s24 = smov %s2084_s25 }
 0x3a4   : > { %s2966_s25 = smov %s2088_s26  ;;  %s2967_s26 = smov %s2185_s10 }
 0x3a5   : > { %s2968_s27 = smov %s2173_s30  ;;  %22 = sbr.rel (!%p20_p10) target bundleno = 5 (0x5), region = 99 }
 0x3aa   :  { %1706 = vsyncpa [#allocation4], 1 }
 0x3ab   :  { %1708 = vsyncpa [#allocation4 + $0x1], 1 }
 0x3ac   :  { %1709 = vsyncpa [#allocation5], 1 }
 0x3ad   :  { %1711 = vsyncpa [#allocation5 + $0x1], 1 }

</bundles_post_ra>
